<compile_context>
chip_gen: v6e
topology: v6e:2x2x1
jax: 0.10.0
libtpu: 0.0.40
codegen_flags: <defaults>
</compile_context>

<pallas_src>
import functools

import jax
import jax.numpy as jnp
from jax.experimental import pallas as pl
from jax.experimental.pallas import tpu as pltpu


def _round_up(x, m):
    return (x + m - 1) // m * m


def _vmem_capacity_bytes():
    """Physical VMEM per TensorCore; conservative fallback if the query fails."""
    default = 64 * 1024 * 1024  # v7x per-TC capacity: safe lower bound everywhere
    try:
        info = pltpu.get_tpu_info()
    except Exception:
        # Hardware-query convenience only (e.g. non-TPU tracing context); the
        # pallas_call itself is NOT wrapped in any exception handler.
        return default
    for attr in ("vmem_capacity_bytes", "vmem_bytes", "vmem_size_bytes"):
        val = getattr(info, attr, None)
        if val:
            return int(val)
    return default


def _choose_time_chunk(seq_len, bt, e_pad, h_pad, itemsize, vmem_cap):
    """Pick timesteps-per-grid-step (tc) from a per-generation VMEM budget."""
    # Resident blocks: W_ih^T, W_hh^T, bias, plus h0/c0/hn/cn state tiles.
    resident = ((e_pad + h_pad) * 4 * h_pad + 4 * h_pad) * itemsize
    resident += 6 * bt * h_pad * 4
    # Per-timestep streamed / scratch bytes:
    #   x chunk (double-buffered) + out chunk (double-buffered) + gx scratch.
    per_t = 2 * bt * e_pad * itemsize + 2 * bt * h_pad * 4 + bt * 4 * h_pad * 4
    budget = max(vmem_cap // 2 - 2 * resident, per_t)
    tc = 1
    for cand in (32, 16, 8, 4, 2):
        if cand * per_t <= budget:
            tc = cand
            break
    # Do not pad the time axis far past the real sequence length.
    tc = max(1, min(tc, _round_up(seq_len, 8)))
    return tc, resident, per_t


def _lstm_kernel(x_ref, wih_ref, whh_ref, bias_ref, h0_ref, c0_ref,
                 out_ref, hn_ref, cn_ref, gx_scr, *, seq_len):
    """Grid = (batch_blocks [parallel], time_chunks [arbitrary]).

    x_ref   : (tc, Bt, E_pad)     embedded inputs for this chunk (compute dtype)
    wih_ref : (E_pad, 4*H_pad)    input weights, resident
    whh_ref : (H_pad, 4*H_pad)    recurrent weights, resident
    bias_ref: (1, 4*H_pad)        b_ih + b_hh, resident
    h0/c0   : (Bt, H_pad)         initial state for this batch block
    out_ref : (tc, Bt, H_pad)     per-step hidden outputs for this chunk
    hn/cn   : (Bt, H_pad)         resident output blocks, used as the
                                  cross-chunk h/c carry
    gx_scr  : (tc, Bt, 4*H_pad)   VMEM scratch for the chunk's input gates
    """
    tc, bt, e_pad = x_ref.shape
    h_pad = hn_ref.shape[-1]
    has_tail = (seq_len % tc) != 0
    wdt = whh_ref.dtype

    chunk = pl.program_id(1)

    @pl.when(chunk == 0)
    def _():
        hn_ref[...] = h0_ref[...]
        cn_ref[...] = c0_ref[...]

    # --- fused input projection for the whole chunk: one MXU matmul (M=tc*Bt).
    x = x_ref[...].reshape(tc * bt, e_pad)
    gx = jnp.dot(x, wih_ref[...], preferred_element_type=jnp.float32)
    gx = gx + bias_ref[...]
    gx_scr[...] = gx.reshape(tc, bt, 4 * h_pad)

    # --- serial recurrence with register-carried state (no per-step VMEM
    #     round trip on the critical path).
    h = hn_ref[...]
    c = cn_ref[...]

    def step(j, carry):
        h_prev, c_prev = carry
        gates = gx_scr[j] + jnp.dot(h_prev.astype(wdt), whh_ref[...],
                                    preferred_element_type=jnp.float32)
        # Gate k occupies lanes [k*H_pad, (k+1)*H_pad): 128-aligned selects.
        i_g = jax.nn.sigmoid(gates[:, 0 * h_pad:1 * h_pad])
        f_g = jax.nn.sigmoid(gates[:, 1 * h_pad:2 * h_pad])
        g_g = jnp.tanh(gates[:, 2 * h_pad:3 * h_pad])
        o_g = jax.nn.sigmoid(gates[:, 3 * h_pad:4 * h_pad])
        c_new = f_g * c_prev + i_g * g_g
        h_new = o_g * jnp.tanh(c_new)
        out_ref[j] = h_new.astype(out_ref.dtype)

        if has_tail:
            # Capture the true final state mid-chunk; padded tail steps are
            # free to compute junk that never feeds back.
            @pl.when(chunk * tc + j == seq_len - 1)
            def _():
                hn_ref[...] = h_new
                cn_ref[...] = c_new

        return (h_new, c_new)

    h, c = jax.lax.fori_loop(0, tc, step, (h, c), unroll=True)

    # Write the cross-chunk carry once per chunk (skip on the tail chunk,
    # whose final state was captured inside the loop above).
    if has_tail:
        @pl.when((chunk + 1) * tc <= seq_len)
        def _():
            hn_ref[...] = h
            cn_ref[...] = c
    else:
        hn_ref[...] = h
        cn_ref[...] = c


def lstm_forward(x_emb, h0, c0, w_ih, w_hh, b_ih, b_hh,
                 compute_dtype=jnp.float32):
    """x_emb: (S, B, E); h0/c0: (1, B, H); PyTorch-shaped LSTM weights.

    compute_dtype: dtype of the MXU operands (x, W_ih^T, W_hh^T).  Use
    jnp.bfloat16 for large E/H (halves HBM/VMEM for the streamed tensors);
    f32 by default for strict parity with PyTorch f32 numerics.  Gate math
    and the h/c state are always f32.
    """
    S, B, E = x_emb.shape
    H = h0.shape[-1]

    bt = min(128, _round_up(B, 8))           # batch tile (per-core block)
    B_pad = _round_up(B, bt)
    H_pad = _round_up(H, 128)
    E_pad = _round_up(E, 128)

    itemsize = jnp.dtype(compute_dtype).itemsize
    vmem_cap = _vmem_capacity_bytes()
    tc, resident, per_t = _choose_time_chunk(S, bt, E_pad, H_pad, itemsize, vmem_cap)
    S_pad = _round_up(S, tc)
    vmem_limit = int(min(vmem_cap * 3 // 4,
                         max(32 * 1024 * 1024, 4 * (resident + tc * per_t))))

    # ---- weight prep: pad the 4H axis PER GATE so gate k starts at k*H_pad.
    wih4 = jnp.pad(w_ih.reshape(4, H, E), ((0, 0), (0, H_pad - H), (0, 0)))
    wih_t = jnp.transpose(wih4, (2, 0, 1)).reshape(E, 4 * H_pad)
    wih_t = jnp.pad(wih_t, ((0, E_pad - E), (0, 0))).astype(compute_dtype)    # (Ep,4Hp)

    whh4 = jnp.pad(w_hh.reshape(4, H, H),
                   ((0, 0), (0, H_pad - H), (0, H_pad - H)))
    whh_t = jnp.transpose(whh4, (2, 0, 1)).reshape(H_pad, 4 * H_pad)
    whh_t = whh_t.astype(compute_dtype)                                       # (Hp,4Hp)

    bias = jnp.pad((b_ih + b_hh).reshape(4, H),
                   ((0, 0), (0, H_pad - H))).reshape(1, 4 * H_pad)
    bias = bias.astype(jnp.float32)                                           # (1,4Hp)

    x_p = jnp.pad(x_emb, ((0, S_pad - S), (0, B_pad - B), (0, E_pad - E)))
    x_p = x_p.astype(compute_dtype)                                           # (Sp,Bp,Ep)
    h0p = jnp.pad(h0[0], ((0, B_pad - B), (0, H_pad - H))).astype(jnp.float32)
    c0p = jnp.pad(c0[0], ((0, B_pad - B), (0, H_pad - H))).astype(jnp.float32)

    num_b = B_pad // bt
    num_c = S_pad // tc

    grid_spec = pltpu.PrefetchScalarGridSpec(
        num_scalar_prefetch=0,
        grid=(num_b, num_c),
        in_specs=[
            pl.BlockSpec((tc, bt, E_pad), lambda b, i: (i, b, 0)),       # x chunk
            pl.BlockSpec((E_pad, 4 * H_pad), lambda b, i: (0, 0)),       # W_ih^T
            pl.BlockSpec((H_pad, 4 * H_pad), lambda b, i: (0, 0)),       # W_hh^T
            pl.BlockSpec((1, 4 * H_pad), lambda b, i: (0, 0)),           # bias
            pl.BlockSpec((bt, H_pad), lambda b, i: (b, 0)),              # h0
            pl.BlockSpec((bt, H_pad), lambda b, i: (b, 0)),              # c0
        ],
        out_specs=[
            pl.BlockSpec((tc, bt, H_pad), lambda b, i: (i, b, 0)),       # opt_word
            pl.BlockSpec((bt, H_pad), lambda b, i: (b, 0)),              # h_n (carry)
            pl.BlockSpec((bt, H_pad), lambda b, i: (b, 0)),              # c_n (carry)
        ],
        scratch_shapes=[
            pltpu.VMEM((tc, bt, 4 * H_pad), jnp.float32),                # gates_x chunk
        ],
    )

    out_shapes = (
        jax.ShapeDtypeStruct((S_pad, B_pad, H_pad), jnp.float32),
        jax.ShapeDtypeStruct((B_pad, H_pad), jnp.float32),
        jax.ShapeDtypeStruct((B_pad, H_pad), jnp.float32),
    )

    out, hn, cn = pl.pallas_call(
        functools.partial(_lstm_kernel, seq_len=S),
        out_shape=out_shapes,
        grid_spec=grid_spec,
        compiler_params=pltpu.CompilerParams(
            dimension_semantics=("parallel", "arbitrary"),  # batch || , time = recurrence
            vmem_limit_bytes=vmem_limit,
        ),
    )(x_p, wih_t, whh_t, bias, h0p, c0p)

    opt_word = out[:S, :B, :H]
    h_n = hn[None, :B, :H]
    c_n = cn[None, :B, :H]
    return opt_word, h_n, c_n


class LSTM:
    """JAX/Pallas port of the PyTorch LSTM module (embedding + 1-layer LSTM)."""

    def __init__(self, batch_size, token_count, embed_dim, hidden, key):
        self.batch_size = batch_size
        self.token_count = token_count
        self.embed_dim = embed_dim
        self.hidden = hidden

        keys = jax.random.split(key, 6)
        # nn.Embedding default init: N(0, 1)
        self.embedding = jax.random.normal(
            keys[0], (token_count, embed_dim), dtype=jnp.float32)
        # nn.LSTM default init: U(-1/sqrt(H), 1/sqrt(H))
        k = 1.0 / jnp.sqrt(hidden)
        self.w_ih = jax.random.uniform(
            keys[1], (4 * hidden, embed_dim), minval=-k, maxval=k,
            dtype=jnp.float32)
        self.w_hh = jax.random.uniform(
            keys[2], (4 * hidden, hidden), minval=-k, maxval=k,
            dtype=jnp.float32)
        self.b_ih = jax.random.uniform(
            keys[3], (4 * hidden,), minval=-k, maxval=k, dtype=jnp.float32)
        self.b_hh = jax.random.uniform(
            keys[4], (4 * hidden,), minval=-k, maxval=k, dtype=jnp.float32)

    def init_hidden(self):
        z = jnp.zeros((1, self.batch_size, self.hidden), dtype=jnp.float32)
        return (z, z)

    def forward(self, tokens, state_word):
        # TODO(synk): embedding lookup (gather) stays in plain JAX glue.
        embedded = jnp.take(self.embedding, tokens, axis=0)   # (S, B, E)
        h0, c0 = state_word
        opt_word, h_n, c_n = lstm_forward(
            embedded, h0, c0, self.w_ih, self.w_hh, self.b_ih, self.b_hh)
        return opt_word, (h_n, c_n)


def _reference_lstm(x_emb, h0, c0, w_ih, w_hh, b_ih, b_hh):
    """Pure-JAX reference (lax.scan) to sanity-check the kernel."""
    H = h0.shape[-1]

    def step(carry, x_t):
        h, c = carry
        gates = x_t @ w_ih.T + h @ w_hh.T + b_ih + b_hh
        i = jax.nn.sigmoid(gates[:, 0 * H:1 * H])
        f = jax.nn.sigmoid(gates[:, 1 * H:2 * H])
        g = jnp.tanh(gates[:, 2 * H:3 * H])
        o = jax.nn.sigmoid(gates[:, 3 * H:4 * H])
        c_new = f * c + i * g
        h_new = o * jnp.tanh(c_new)
        return (h_new, c_new), h_new

    (h_n, c_n), ys = jax.lax.scan(step, (h0[0], c0[0]), x_emb)
    return ys, h_n[None], c_n[None]


if __name__ == "__main__":
    batch_size, token_count, embed_dim, hidden, seq_len = 2, 20, 16, 32, 8

    key = jax.random.PRNGKey(0)
    k_model, k_tok = jax.random.split(key)

    model = LSTM(batch_size, token_count, embed_dim, hidden, k_model)
    tokens = jax.random.randint(
        k_tok, (seq_len, batch_size), 0, token_count, dtype=jnp.int32)
    state0 = model.init_hidden()

    opt_word, (h_n, c_n) = model.forward(tokens, state0)
    jax.block_until_ready((opt_word, h_n, c_n))

    # Sanity check against pure-JAX reference.
    emb = jnp.take(model.embedding, tokens, axis=0)
    ref_y, ref_h, ref_c = _reference_lstm(
        emb, state0[0], state0[1],
        model.w_ih, model.w_hh, model.b_ih, model.b_hh)
    assert jnp.allclose(opt_word, ref_y, atol=5e-4), "output mismatch"
    assert jnp.allclose(h_n, ref_h, atol=5e-4), "h_n mismatch"
    assert jnp.allclose(c_n, ref_c, atol=5e-4), "c_n mismatch"

    print("KERNEL_OK")
</pallas_src>

<mosaic_0001>
module attributes {stable_mosaic.version = 11 : i64} {
  func.func @_lstm_kernel(%arg0: i32, %arg1: i32, %arg2: memref<8x8x128xf32, #tpu.memory_space<vmem>>, %arg3: memref<128x512xf32, #tpu.memory_space<vmem>>, %arg4: memref<128x512xf32, #tpu.memory_space<vmem>>, %arg5: memref<1x512xf32, #tpu.memory_space<vmem>>, %arg6: memref<8x128xf32, #tpu.memory_space<vmem>>, %arg7: memref<8x128xf32, #tpu.memory_space<vmem>>, %arg8: memref<8x8x128xf32, #tpu.memory_space<vmem>>, %arg9: memref<8x128xf32, #tpu.memory_space<vmem>>, %arg10: memref<8x128xf32, #tpu.memory_space<vmem>>, %arg11: memref<8x8x512xf32, #tpu.memory_space<vmem>>) attributes {dimension_semantics = [#tpu.dimension_semantics<parallel>, #tpu.dimension_semantics<arbitrary>], iteration_bounds = array<i64: 1, 1>, scalar_prefetch = 0 : i64, scratch_operands = 1 : i64, tpu.core_type = #tpu.core_type<tc>, window_params = [{transform_indices = @transform_0, window_bounds = array<i64: 8, 8, 128>}, {pipeline_mode = #tpu.pipeline_mode<synchronous>, transform_indices = @transform_1, window_bounds = array<i64: 128, 512>}, {pipeline_mode = #tpu.pipeline_mode<synchronous>, transform_indices = @transform_2, window_bounds = array<i64: 128, 512>}, {pipeline_mode = #tpu.pipeline_mode<synchronous>, transform_indices = @transform_3, window_bounds = array<i64: 1, 512>}, {transform_indices = @transform_4, window_bounds = array<i64: 8, 128>}, {transform_indices = @transform_5, window_bounds = array<i64: 8, 128>}, {transform_indices = @transform_6, window_bounds = array<i64: 8, 8, 128>}, {transform_indices = @transform_7, window_bounds = array<i64: 8, 128>}, {transform_indices = @transform_8, window_bounds = array<i64: 8, 128>}]} {
    %c0_i32 = arith.constant 0 : i32
    %0 = arith.cmpi eq, %arg1, %c0_i32 : i32
    %1 = arith.extui %0 : i1 to i32
    %c0_i32_0 = arith.constant 0 : i32
    %2 = arith.cmpi ne, %1, %c0_i32_0 : i32
    scf.if %2 {
      %c0_99 = arith.constant 0 : index
      %c0_100 = arith.constant 0 : index
      %296 = vector.load %arg6[%c0_99, %c0_100] : memref<8x128xf32, #tpu.memory_space<vmem>>, vector<8x128xf32>
      %c0_101 = arith.constant 0 : index
      %c0_102 = arith.constant 0 : index
      %297 = vector.load %arg9[%c0_101, %c0_102] : memref<8x128xf32, #tpu.memory_space<vmem>>, vector<8x128xf32>
      tpu.vector_store %arg9[%c0_101, %c0_102], %296 {strides = array<i32>} : memref<8x128xf32, #tpu.memory_space<vmem>>, vector<8x128xf32>,
      %c0_103 = arith.constant 0 : index
      %c0_104 = arith.constant 0 : index
      %298 = vector.load %arg7[%c0_103, %c0_104] : memref<8x128xf32, #tpu.memory_space<vmem>>, vector<8x128xf32>
      %c0_105 = arith.constant 0 : index
      %c0_106 = arith.constant 0 : index
      %299 = vector.load %arg10[%c0_105, %c0_106] : memref<8x128xf32, #tpu.memory_space<vmem>>, vector<8x128xf32>
      tpu.vector_store %arg10[%c0_105, %c0_106], %298 {strides = array<i32>} : memref<8x128xf32, #tpu.memory_space<vmem>>, vector<8x128xf32>,
    } else {
    }
    %c0 = arith.constant 0 : index
    %c0_1 = arith.constant 0 : index
    %c0_2 = arith.constant 0 : index
    %3 = vector.load %arg2[%c0, %c0_1, %c0_2] : memref<8x8x128xf32, #tpu.memory_space<vmem>>, vector<8x8x128xf32>
    %4 = vector.shape_cast %3 : vector<8x8x128xf32> to vector<64x128xf32>
    %c0_3 = arith.constant 0 : index
    %c0_4 = arith.constant 0 : index
    %5 = vector.load %arg3[%c0_3, %c0_4] : memref<128x512xf32, #tpu.memory_space<vmem>>, vector<128x512xf32>
    %cst = arith.constant dense<0.000000e+00> : vector<64x512xf32>
    %6 = tpu.matmul %4, %5, %cst {dimension_numbers = #tpu.dot_dimension_numbers<[1], [0], [0], [1], [0, 0, 1, 1], [], []>} : vector<64x128xf32>, vector<128x512xf32>, vector<64x512xf32> -> vector<64x512xf32>
    %c0_5 = arith.constant 0 : index
    %c0_6 = arith.constant 0 : index
    %7 = vector.load %arg5[%c0_5, %c0_6] : memref<1x512xf32, #tpu.memory_space<vmem>>, vector<1x512xf32>
    %8 = vector.broadcast %7 : vector<1x512xf32> to vector<64x512xf32>
    %9 = arith.addf %6, %8 : vector<64x512xf32>
    %10 = vector.shape_cast %9 : vector<64x512xf32> to vector<8x8x512xf32>
    %c0_7 = arith.constant 0 : index
    %c0_8 = arith.constant 0 : index
    %c0_9 = arith.constant 0 : index
    %11 = vector.load %arg11[%c0_7, %c0_8, %c0_9] : memref<8x8x512xf32, #tpu.memory_space<vmem>>, vector<8x8x512xf32>
    tpu.vector_store %arg11[%c0_7, %c0_8, %c0_9], %10 {strides = array<i32>} : memref<8x8x512xf32, #tpu.memory_space<vmem>>, vector<8x8x512xf32>,
    %c0_10 = arith.constant 0 : index
    %c0_11 = arith.constant 0 : index
    %12 = vector.load %arg9[%c0_10, %c0_11] : memref<8x128xf32, #tpu.memory_space<vmem>>, vector<8x128xf32>
    %c0_12 = arith.constant 0 : index
    %c0_13 = arith.constant 0 : index
    %13 = vector.load %arg10[%c0_12, %c0_13] : memref<8x128xf32, #tpu.memory_space<vmem>>, vector<8x128xf32>
    %c0_i32_14 = arith.constant 0 : i32
    %14 = arith.index_cast %c0_i32_14 : i32 to index
    %c0_15 = arith.constant 0 : index
    %c0_16 = arith.constant 0 : index
    %15 = vector.load %arg11[%14, %c0_15, %c0_16] : memref<8x8x512xf32, #tpu.memory_space<vmem>>, vector<1x8x512xf32>
    %16 = vector.shape_cast %15 : vector<1x8x512xf32> to vector<8x512xf32>
    %c0_17 = arith.constant 0 : index
    %c0_18 = arith.constant 0 : index
    %17 = vector.load %arg4[%c0_17, %c0_18] : memref<128x512xf32, #tpu.memory_space<vmem>>, vector<128x512xf32>
    %cst_19 = arith.constant dense<0.000000e+00> : vector<8x512xf32>
    %18 = tpu.matmul %12, %17, %cst_19 {dimension_numbers = #tpu.dot_dimension_numbers<[1], [0], [0], [1], [0, 0, 1, 1], [], []>} : vector<8x128xf32>, vector<128x512xf32>, vector<8x512xf32> -> vector<8x512xf32>
    %19 = arith.addf %16, %18 : vector<8x512xf32>
    %20 = vector.extract_strided_slice %19 {offsets = [0, 0], sizes = [8, 128], strides = [1, 1]} : vector<8x512xf32> to vector<8x128xf32>
    %21 = arith.negf %20 : vector<8x128xf32>
    %22 = math.exp %21 : vector<8x128xf32>
    %cst_20 = arith.constant 1.000000e+00 : f32
    %23 = vector.broadcast %cst_20 : f32 to vector<8x128xf32>
    %24 = arith.addf %23, %22 : vector<8x128xf32>
    %25 = arith.divf %23, %24 : vector<8x128xf32>
    %26 = vector.extract_strided_slice %19 {offsets = [0, 128], sizes = [8, 128], strides = [1, 1]} : vector<8x512xf32> to vector<8x128xf32>
    %27 = arith.negf %26 : vector<8x128xf32>
    %28 = math.exp %27 : vector<8x128xf32>
    %cst_21 = arith.constant 1.000000e+00 : f32
    %29 = vector.broadcast %cst_21 : f32 to vector<8x128xf32>
    %30 = arith.addf %29, %28 : vector<8x128xf32>
    %31 = arith.divf %29, %30 : vector<8x128xf32>
    %32 = vector.extract_strided_slice %19 {offsets = [0, 256], sizes = [8, 128], strides = [1, 1]} : vector<8x512xf32> to vector<8x128xf32>
    %33 = math.tanh %32 : vector<8x128xf32>
    %34 = vector.extract_strided_slice %19 {offsets = [0, 384], sizes = [8, 128], strides = [1, 1]} : vector<8x512xf32> to vector<8x128xf32>
    %35 = arith.negf %34 : vector<8x128xf32>
    %36 = math.exp %35 : vector<8x128xf32>
    %cst_22 = arith.constant 1.000000e+00 : f32
    %37 = vector.broadcast %cst_22 : f32 to vector<8x128xf32>
    %38 = arith.addf %37, %36 : vector<8x128xf32>
    %39 = arith.divf %37, %38 : vector<8x128xf32>
    %40 = arith.mulf %31, %13 : vector<8x128xf32>
    %41 = arith.mulf %25, %33 : vector<8x128xf32>
    %42 = arith.addf %40, %41 : vector<8x128xf32>
    %43 = math.tanh %42 : vector<8x128xf32>
    %44 = arith.mulf %39, %43 : vector<8x128xf32>
    %45 = arith.index_cast %c0_i32_14 : i32 to index
    %c0_23 = arith.constant 0 : index
    %c0_24 = arith.constant 0 : index
    %46 = vector.load %arg8[%45, %c0_23, %c0_24] : memref<8x8x128xf32, #tpu.memory_space<vmem>>, vector<1x8x128xf32>
    %47 = vector.shape_cast %46 : vector<1x8x128xf32> to vector<8x128xf32>
    %48 = vector.shape_cast %44 : vector<8x128xf32> to vector<1x8x128xf32>
    tpu.vector_store %arg8[%45, %c0_23, %c0_24], %48 {strides = array<i32>} : memref<8x8x128xf32, #tpu.memory_space<vmem>>, vector<1x8x128xf32>,
    %c1_i32 = arith.constant 1 : i32
    %49 = arith.index_cast %c1_i32 : i32 to index
    %c0_25 = arith.constant 0 : index
    %c0_26 = arith.constant 0 : index
    %50 = vector.load %arg11[%49, %c0_25, %c0_26] : memref<8x8x512xf32, #tpu.memory_space<vmem>>, vector<1x8x512xf32>
    %51 = vector.shape_cast %50 : vector<1x8x512xf32> to vector<8x512xf32>
    %c0_27 = arith.constant 0 : index
    %c0_28 = arith.constant 0 : index
    %52 = vector.load %arg4[%c0_27, %c0_28] : memref<128x512xf32, #tpu.memory_space<vmem>>, vector<128x512xf32>
    %cst_29 = arith.constant dense<0.000000e+00> : vector<8x512xf32>
    %53 = tpu.matmul %44, %52, %cst_29 {dimension_numbers = #tpu.dot_dimension_numbers<[1], [0], [0], [1], [0, 0, 1, 1], [], []>} : vector<8x128xf32>, vector<128x512xf32>, vector<8x512xf32> -> vector<8x512xf32>
    %54 = arith.addf %51, %53 : vector<8x512xf32>
    %55 = vector.extract_strided_slice %54 {offsets = [0, 0], sizes = [8, 128], strides = [1, 1]} : vector<8x512xf32> to vector<8x128xf32>
    %56 = arith.negf %55 : vector<8x128xf32>
    %57 = math.exp %56 : vector<8x128xf32>
    %cst_30 = arith.constant 1.000000e+00 : f32
    %58 = vector.broadcast %cst_30 : f32 to vector<8x128xf32>
    %59 = arith.addf %58, %57 : vector<8x128xf32>
    %60 = arith.divf %58, %59 : vector<8x128xf32>
    %61 = vector.extract_strided_slice %54 {offsets = [0, 128], sizes = [8, 128], strides = [1, 1]} : vector<8x512xf32> to vector<8x128xf32>
    %62 = arith.negf %61 : vector<8x128xf32>
    %63 = math.exp %62 : vector<8x128xf32>
    %cst_31 = arith.constant 1.000000e+00 : f32
    %64 = vector.broadcast %cst_31 : f32 to vector<8x128xf32>
    %65 = arith.addf %64, %63 : vector<8x128xf32>
    %66 = arith.divf %64, %65 : vector<8x128xf32>
    %67 = vector.extract_strided_slice %54 {offsets = [0, 256], sizes = [8, 128], strides = [1, 1]} : vector<8x512xf32> to vector<8x128xf32>
    %68 = math.tanh %67 : vector<8x128xf32>
    %69 = vector.extract_strided_slice %54 {offsets = [0, 384], sizes = [8, 128], strides = [1, 1]} : vector<8x512xf32> to vector<8x128xf32>
    %70 = arith.negf %69 : vector<8x128xf32>
    %71 = math.exp %70 : vector<8x128xf32>
    %cst_32 = arith.constant 1.000000e+00 : f32
    %72 = vector.broadcast %cst_32 : f32 to vector<8x128xf32>
    %73 = arith.addf %72, %71 : vector<8x128xf32>
    %74 = arith.divf %72, %73 : vector<8x128xf32>
    %75 = arith.mulf %66, %42 : vector<8x128xf32>
    %76 = arith.mulf %60, %68 : vector<8x128xf32>
    %77 = arith.addf %75, %76 : vector<8x128xf32>
    %78 = math.tanh %77 : vector<8x128xf32>
    %79 = arith.mulf %74, %78 : vector<8x128xf32>
    %80 = arith.index_cast %c1_i32 : i32 to index
    %c0_33 = arith.constant 0 : index
    %c0_34 = arith.constant 0 : index
    %81 = vector.load %arg8[%80, %c0_33, %c0_34] : memref<8x8x128xf32, #tpu.memory_space<vmem>>, vector<1x8x128xf32>
    %82 = vector.shape_cast %81 : vector<1x8x128xf32> to vector<8x128xf32>
    %83 = vector.shape_cast %79 : vector<8x128xf32> to vector<1x8x128xf32>
    tpu.vector_store %arg8[%80, %c0_33, %c0_34], %83 {strides = array<i32>} : memref<8x8x128xf32, #tpu.memory_space<vmem>>, vector<1x8x128xf32>,
    %c2_i32 = arith.constant 2 : i32
    %84 = arith.index_cast %c2_i32 : i32 to index
    %c0_35 = arith.constant 0 : index
    %c0_36 = arith.constant 0 : index
    %85 = vector.load %arg11[%84, %c0_35, %c0_36] : memref<8x8x512xf32, #tpu.memory_space<vmem>>, vector<1x8x512xf32>
    %86 = vector.shape_cast %85 : vector<1x8x512xf32> to vector<8x512xf32>
    %c0_37 = arith.constant 0 : index
    %c0_38 = arith.constant 0 : index
    %87 = vector.load %arg4[%c0_37, %c0_38] : memref<128x512xf32, #tpu.memory_space<vmem>>, vector<128x512xf32>
    %cst_39 = arith.constant dense<0.000000e+00> : vector<8x512xf32>
    %88 = tpu.matmul %79, %87, %cst_39 {dimension_numbers = #tpu.dot_dimension_numbers<[1], [0], [0], [1], [0, 0, 1, 1], [], []>} : vector<8x128xf32>, vector<128x512xf32>, vector<8x512xf32> -> vector<8x512xf32>
    %89 = arith.addf %86, %88 : vector<8x512xf32>
    %90 = vector.extract_strided_slice %89 {offsets = [0, 0], sizes = [8, 128], strides = [1, 1]} : vector<8x512xf32> to vector<8x128xf32>
    %91 = arith.negf %90 : vector<8x128xf32>
    %92 = math.exp %91 : vector<8x128xf32>
    %cst_40 = arith.constant 1.000000e+00 : f32
    %93 = vector.broadcast %cst_40 : f32 to vector<8x128xf32>
    %94 = arith.addf %93, %92 : vector<8x128xf32>
    %95 = arith.divf %93, %94 : vector<8x128xf32>
    %96 = vector.extract_strided_slice %89 {offsets = [0, 128], sizes = [8, 128], strides = [1, 1]} : vector<8x512xf32> to vector<8x128xf32>
    %97 = arith.negf %96 : vector<8x128xf32>
    %98 = math.exp %97 : vector<8x128xf32>
    %cst_41 = arith.constant 1.000000e+00 : f32
    %99 = vector.broadcast %cst_41 : f32 to vector<8x128xf32>
    %100 = arith.addf %99, %98 : vector<8x128xf32>
    %101 = arith.divf %99, %100 : vector<8x128xf32>
    %102 = vector.extract_strided_slice %89 {offsets = [0, 256], sizes = [8, 128], strides = [1, 1]} : vector<8x512xf32> to vector<8x128xf32>
    %103 = math.tanh %102 : vector<8x128xf32>
    %104 = vector.extract_strided_slice %89 {offsets = [0, 384], sizes = [8, 128], strides = [1, 1]} : vector<8x512xf32> to vector<8x128xf32>
    %105 = arith.negf %104 : vector<8x128xf32>
    %106 = math.exp %105 : vector<8x128xf32>
    %cst_42 = arith.constant 1.000000e+00 : f32
    %107 = vector.broadcast %cst_42 : f32 to vector<8x128xf32>
    %108 = arith.addf %107, %106 : vector<8x128xf32>
    %109 = arith.divf %107, %108 : vector<8x128xf32>
    %110 = arith.mulf %101, %77 : vector<8x128xf32>
    %111 = arith.mulf %95, %103 : vector<8x128xf32>
    %112 = arith.addf %110, %111 : vector<8x128xf32>
    %113 = math.tanh %112 : vector<8x128xf32>
    %114 = arith.mulf %109, %113 : vector<8x128xf32>
    %115 = arith.index_cast %c2_i32 : i32 to index
    %c0_43 = arith.constant 0 : index
    %c0_44 = arith.constant 0 : index
    %116 = vector.load %arg8[%115, %c0_43, %c0_44] : memref<8x8x128xf32, #tpu.memory_space<vmem>>, vector<1x8x128xf32>
    %117 = vector.shape_cast %116 : vector<1x8x128xf32> to vector<8x128xf32>
    %118 = vector.shape_cast %114 : vector<8x128xf32> to vector<1x8x128xf32>
    tpu.vector_store %arg8[%115, %c0_43, %c0_44], %118 {strides = array<i32>} : memref<8x8x128xf32, #tpu.memory_space<vmem>>, vector<1x8x128xf32>,
    %c3_i32 = arith.constant 3 : i32
    %119 = arith.index_cast %c3_i32 : i32 to index
    %c0_45 = arith.constant 0 : index
    %c0_46 = arith.constant 0 : index
    %120 = vector.load %arg11[%119, %c0_45, %c0_46] : memref<8x8x512xf32, #tpu.memory_space<vmem>>, vector<1x8x512xf32>
    %121 = vector.shape_cast %120 : vector<1x8x512xf32> to vector<8x512xf32>
    %c0_47 = arith.constant 0 : index
    %c0_48 = arith.constant 0 : index
    %122 = vector.load %arg4[%c0_47, %c0_48] : memref<128x512xf32, #tpu.memory_space<vmem>>, vector<128x512xf32>
    %cst_49 = arith.constant dense<0.000000e+00> : vector<8x512xf32>
    %123 = tpu.matmul %114, %122, %cst_49 {dimension_numbers = #tpu.dot_dimension_numbers<[1], [0], [0], [1], [0, 0, 1, 1], [], []>} : vector<8x128xf32>, vector<128x512xf32>, vector<8x512xf32> -> vector<8x512xf32>
    %124 = arith.addf %121, %123 : vector<8x512xf32>
    %125 = vector.extract_strided_slice %124 {offsets = [0, 0], sizes = [8, 128], strides = [1, 1]} : vector<8x512xf32> to vector<8x128xf32>
    %126 = arith.negf %125 : vector<8x128xf32>
    %127 = math.exp %126 : vector<8x128xf32>
    %cst_50 = arith.constant 1.000000e+00 : f32
    %128 = vector.broadcast %cst_50 : f32 to vector<8x128xf32>
    %129 = arith.addf %128, %127 : vector<8x128xf32>
    %130 = arith.divf %128, %129 : vector<8x128xf32>
    %131 = vector.extract_strided_slice %124 {offsets = [0, 128], sizes = [8, 128], strides = [1, 1]} : vector<8x512xf32> to vector<8x128xf32>
    %132 = arith.negf %131 : vector<8x128xf32>
    %133 = math.exp %132 : vector<8x128xf32>
    %cst_51 = arith.constant 1.000000e+00 : f32
    %134 = vector.broadcast %cst_51 : f32 to vector<8x128xf32>
    %135 = arith.addf %134, %133 : vector<8x128xf32>
    %136 = arith.divf %134, %135 : vector<8x128xf32>
    %137 = vector.extract_strided_slice %124 {offsets = [0, 256], sizes = [8, 128], strides = [1, 1]} : vector<8x512xf32> to vector<8x128xf32>
    %138 = math.tanh %137 : vector<8x128xf32>
    %139 = vector.extract_strided_slice %124 {offsets = [0, 384], sizes = [8, 128], strides = [1, 1]} : vector<8x512xf32> to vector<8x128xf32>
    %140 = arith.negf %139 : vector<8x128xf32>
    %141 = math.exp %140 : vector<8x128xf32>
    %cst_52 = arith.constant 1.000000e+00 : f32
    %142 = vector.broadcast %cst_52 : f32 to vector<8x128xf32>
    %143 = arith.addf %142, %141 : vector<8x128xf32>
    %144 = arith.divf %142, %143 : vector<8x128xf32>
    %145 = arith.mulf %136, %112 : vector<8x128xf32>
    %146 = arith.mulf %130, %138 : vector<8x128xf32>
    %147 = arith.addf %145, %146 : vector<8x128xf32>
    %148 = math.tanh %147 : vector<8x128xf32>
    %149 = arith.mulf %144, %148 : vector<8x128xf32>
    %150 = arith.index_cast %c3_i32 : i32 to index
    %c0_53 = arith.constant 0 : index
    %c0_54 = arith.constant 0 : index
    %151 = vector.load %arg8[%150, %c0_53, %c0_54] : memref<8x8x128xf32, #tpu.memory_space<vmem>>, vector<1x8x128xf32>
    %152 = vector.shape_cast %151 : vector<1x8x128xf32> to vector<8x128xf32>
    %153 = vector.shape_cast %149 : vector<8x128xf32> to vector<1x8x128xf32>
    tpu.vector_store %arg8[%150, %c0_53, %c0_54], %153 {strides = array<i32>} : memref<8x8x128xf32, #tpu.memory_space<vmem>>, vector<1x8x128xf32>,
    %c4_i32 = arith.constant 4 : i32
    %154 = arith.index_cast %c4_i32 : i32 to index
    %c0_55 = arith.constant 0 : index
    %c0_56 = arith.constant 0 : index
    %155 = vector.load %arg11[%154, %c0_55, %c0_56] : memref<8x8x512xf32, #tpu.memory_space<vmem>>, vector<1x8x512xf32>
    %156 = vector.shape_cast %155 : vector<1x8x512xf32> to vector<8x512xf32>
    %c0_57 = arith.constant 0 : index
    %c0_58 = arith.constant 0 : index
    %157 = vector.load %arg4[%c0_57, %c0_58] : memref<128x512xf32, #tpu.memory_space<vmem>>, vector<128x512xf32>
    %cst_59 = arith.constant dense<0.000000e+00> : vector<8x512xf32>
    %158 = tpu.matmul %149, %157, %cst_59 {dimension_numbers = #tpu.dot_dimension_numbers<[1], [0], [0], [1], [0, 0, 1, 1], [], []>} : vector<8x128xf32>, vector<128x512xf32>, vector<8x512xf32> -> vector<8x512xf32>
    %159 = arith.addf %156, %158 : vector<8x512xf32>
    %160 = vector.extract_strided_slice %159 {offsets = [0, 0], sizes = [8, 128], strides = [1, 1]} : vector<8x512xf32> to vector<8x128xf32>
    %161 = arith.negf %160 : vector<8x128xf32>
    %162 = math.exp %161 : vector<8x128xf32>
    %cst_60 = arith.constant 1.000000e+00 : f32
    %163 = vector.broadcast %cst_60 : f32 to vector<8x128xf32>
    %164 = arith.addf %163, %162 : vector<8x128xf32>
    %165 = arith.divf %163, %164 : vector<8x128xf32>
    %166 = vector.extract_strided_slice %159 {offsets = [0, 128], sizes = [8, 128], strides = [1, 1]} : vector<8x512xf32> to vector<8x128xf32>
    %167 = arith.negf %166 : vector<8x128xf32>
    %168 = math.exp %167 : vector<8x128xf32>
    %cst_61 = arith.constant 1.000000e+00 : f32
    %169 = vector.broadcast %cst_61 : f32 to vector<8x128xf32>
    %170 = arith.addf %169, %168 : vector<8x128xf32>
    %171 = arith.divf %169, %170 : vector<8x128xf32>
    %172 = vector.extract_strided_slice %159 {offsets = [0, 256], sizes = [8, 128], strides = [1, 1]} : vector<8x512xf32> to vector<8x128xf32>
    %173 = math.tanh %172 : vector<8x128xf32>
    %174 = vector.extract_strided_slice %159 {offsets = [0, 384], sizes = [8, 128], strides = [1, 1]} : vector<8x512xf32> to vector<8x128xf32>
    %175 = arith.negf %174 : vector<8x128xf32>
    %176 = math.exp %175 : vector<8x128xf32>
    %cst_62 = arith.constant 1.000000e+00 : f32
    %177 = vector.broadcast %cst_62 : f32 to vector<8x128xf32>
    %178 = arith.addf %177, %176 : vector<8x128xf32>
    %179 = arith.divf %177, %178 : vector<8x128xf32>
    %180 = arith.mulf %171, %147 : vector<8x128xf32>
    %181 = arith.mulf %165, %173 : vector<8x128xf32>
    %182 = arith.addf %180, %181 : vector<8x128xf32>
    %183 = math.tanh %182 : vector<8x128xf32>
    %184 = arith.mulf %179, %183 : vector<8x128xf32>
    %185 = arith.index_cast %c4_i32 : i32 to index
    %c0_63 = arith.constant 0 : index
    %c0_64 = arith.constant 0 : index
    %186 = vector.load %arg8[%185, %c0_63, %c0_64] : memref<8x8x128xf32, #tpu.memory_space<vmem>>, vector<1x8x128xf32>
    %187 = vector.shape_cast %186 : vector<1x8x128xf32> to vector<8x128xf32>
    %188 = vector.shape_cast %184 : vector<8x128xf32> to vector<1x8x128xf32>
    tpu.vector_store %arg8[%185, %c0_63, %c0_64], %188 {strides = array<i32>} : memref<8x8x128xf32, #tpu.memory_space<vmem>>, vector<1x8x128xf32>,
    %c5_i32 = arith.constant 5 : i32
    %189 = arith.index_cast %c5_i32 : i32 to index
    %c0_65 = arith.constant 0 : index
    %c0_66 = arith.constant 0 : index
    %190 = vector.load %arg11[%189, %c0_65, %c0_66] : memref<8x8x512xf32, #tpu.memory_space<vmem>>, vector<1x8x512xf32>
    %191 = vector.shape_cast %190 : vector<1x8x512xf32> to vector<8x512xf32>
    %c0_67 = arith.constant 0 : index
    %c0_68 = arith.constant 0 : index
    %192 = vector.load %arg4[%c0_67, %c0_68] : memref<128x512xf32, #tpu.memory_space<vmem>>, vector<128x512xf32>
    %cst_69 = arith.constant dense<0.000000e+00> : vector<8x512xf32>
    %193 = tpu.matmul %184, %192, %cst_69 {dimension_numbers = #tpu.dot_dimension_numbers<[1], [0], [0], [1], [0, 0, 1, 1], [], []>} : vector<8x128xf32>, vector<128x512xf32>, vector<8x512xf32> -> vector<8x512xf32>
    %194 = arith.addf %191, %193 : vector<8x512xf32>
    %195 = vector.extract_strided_slice %194 {offsets = [0, 0], sizes = [8, 128], strides = [1, 1]} : vector<8x512xf32> to vector<8x128xf32>
    %196 = arith.negf %195 : vector<8x128xf32>
    %197 = math.exp %196 : vector<8x128xf32>
    %cst_70 = arith.constant 1.000000e+00 : f32
    %198 = vector.broadcast %cst_70 : f32 to vector<8x128xf32>
    %199 = arith.addf %198, %197 : vector<8x128xf32>
    %200 = arith.divf %198, %199 : vector<8x128xf32>
    %201 = vector.extract_strided_slice %194 {offsets = [0, 128], sizes = [8, 128], strides = [1, 1]} : vector<8x512xf32> to vector<8x128xf32>
    %202 = arith.negf %201 : vector<8x128xf32>
    %203 = math.exp %202 : vector<8x128xf32>
    %cst_71 = arith.constant 1.000000e+00 : f32
    %204 = vector.broadcast %cst_71 : f32 to vector<8x128xf32>
    %205 = arith.addf %204, %203 : vector<8x128xf32>
    %206 = arith.divf %204, %205 : vector<8x128xf32>
    %207 = vector.extract_strided_slice %194 {offsets = [0, 256], sizes = [8, 128], strides = [1, 1]} : vector<8x512xf32> to vector<8x128xf32>
    %208 = math.tanh %207 : vector<8x128xf32>
    %209 = vector.extract_strided_slice %194 {offsets = [0, 384], sizes = [8, 128], strides = [1, 1]} : vector<8x512xf32> to vector<8x128xf32>
    %210 = arith.negf %209 : vector<8x128xf32>
    %211 = math.exp %210 : vector<8x128xf32>
    %cst_72 = arith.constant 1.000000e+00 : f32
    %212 = vector.broadcast %cst_72 : f32 to vector<8x128xf32>
    %213 = arith.addf %212, %211 : vector<8x128xf32>
    %214 = arith.divf %212, %213 : vector<8x128xf32>
    %215 = arith.mulf %206, %182 : vector<8x128xf32>
    %216 = arith.mulf %200, %208 : vector<8x128xf32>
    %217 = arith.addf %215, %216 : vector<8x128xf32>
    %218 = math.tanh %217 : vector<8x128xf32>
    %219 = arith.mulf %214, %218 : vector<8x128xf32>
    %220 = arith.index_cast %c5_i32 : i32 to index
    %c0_73 = arith.constant 0 : index
    %c0_74 = arith.constant 0 : index
    %221 = vector.load %arg8[%220, %c0_73, %c0_74] : memref<8x8x128xf32, #tpu.memory_space<vmem>>, vector<1x8x128xf32>
    %222 = vector.shape_cast %221 : vector<1x8x128xf32> to vector<8x128xf32>
    %223 = vector.shape_cast %219 : vector<8x128xf32> to vector<1x8x128xf32>
    tpu.vector_store %arg8[%220, %c0_73, %c0_74], %223 {strides = array<i32>} : memref<8x8x128xf32, #tpu.memory_space<vmem>>, vector<1x8x128xf32>,
    %c6_i32 = arith.constant 6 : i32
    %224 = arith.index_cast %c6_i32 : i32 to index
    %c0_75 = arith.constant 0 : index
    %c0_76 = arith.constant 0 : index
    %225 = vector.load %arg11[%224, %c0_75, %c0_76] : memref<8x8x512xf32, #tpu.memory_space<vmem>>, vector<1x8x512xf32>
    %226 = vector.shape_cast %225 : vector<1x8x512xf32> to vector<8x512xf32>
    %c0_77 = arith.constant 0 : index
    %c0_78 = arith.constant 0 : index
    %227 = vector.load %arg4[%c0_77, %c0_78] : memref<128x512xf32, #tpu.memory_space<vmem>>, vector<128x512xf32>
    %cst_79 = arith.constant dense<0.000000e+00> : vector<8x512xf32>
    %228 = tpu.matmul %219, %227, %cst_79 {dimension_numbers = #tpu.dot_dimension_numbers<[1], [0], [0], [1], [0, 0, 1, 1], [], []>} : vector<8x128xf32>, vector<128x512xf32>, vector<8x512xf32> -> vector<8x512xf32>
    %229 = arith.addf %226, %228 : vector<8x512xf32>
    %230 = vector.extract_strided_slice %229 {offsets = [0, 0], sizes = [8, 128], strides = [1, 1]} : vector<8x512xf32> to vector<8x128xf32>
    %231 = arith.negf %230 : vector<8x128xf32>
    %232 = math.exp %231 : vector<8x128xf32>
    %cst_80 = arith.constant 1.000000e+00 : f32
    %233 = vector.broadcast %cst_80 : f32 to vector<8x128xf32>
    %234 = arith.addf %233, %232 : vector<8x128xf32>
    %235 = arith.divf %233, %234 : vector<8x128xf32>
    %236 = vector.extract_strided_slice %229 {offsets = [0, 128], sizes = [8, 128], strides = [1, 1]} : vector<8x512xf32> to vector<8x128xf32>
    %237 = arith.negf %236 : vector<8x128xf32>
    %238 = math.exp %237 : vector<8x128xf32>
    %cst_81 = arith.constant 1.000000e+00 : f32
    %239 = vector.broadcast %cst_81 : f32 to vector<8x128xf32>
    %240 = arith.addf %239, %238 : vector<8x128xf32>
    %241 = arith.divf %239, %240 : vector<8x128xf32>
    %242 = vector.extract_strided_slice %229 {offsets = [0, 256], sizes = [8, 128], strides = [1, 1]} : vector<8x512xf32> to vector<8x128xf32>
    %243 = math.tanh %242 : vector<8x128xf32>
    %244 = vector.extract_strided_slice %229 {offsets = [0, 384], sizes = [8, 128], strides = [1, 1]} : vector<8x512xf32> to vector<8x128xf32>
    %245 = arith.negf %244 : vector<8x128xf32>
    %246 = math.exp %245 : vector<8x128xf32>
    %cst_82 = arith.constant 1.000000e+00 : f32
    %247 = vector.broadcast %cst_82 : f32 to vector<8x128xf32>
    %248 = arith.addf %247, %246 : vector<8x128xf32>
    %249 = arith.divf %247, %248 : vector<8x128xf32>
    %250 = arith.mulf %241, %217 : vector<8x128xf32>
    %251 = arith.mulf %235, %243 : vector<8x128xf32>
    %252 = arith.addf %250, %251 : vector<8x128xf32>
    %253 = math.tanh %252 : vector<8x128xf32>
    %254 = arith.mulf %249, %253 : vector<8x128xf32>
    %255 = arith.index_cast %c6_i32 : i32 to index
    %c0_83 = arith.constant 0 : index
    %c0_84 = arith.constant 0 : index
    %256 = vector.load %arg8[%255, %c0_83, %c0_84] : memref<8x8x128xf32, #tpu.memory_space<vmem>>, vector<1x8x128xf32>
    %257 = vector.shape_cast %256 : vector<1x8x128xf32> to vector<8x128xf32>
    %258 = vector.shape_cast %254 : vector<8x128xf32> to vector<1x8x128xf32>
    tpu.vector_store %arg8[%255, %c0_83, %c0_84], %258 {strides = array<i32>} : memref<8x8x128xf32, #tpu.memory_space<vmem>>, vector<1x8x128xf32>,
    %c7_i32 = arith.constant 7 : i32
    %259 = arith.index_cast %c7_i32 : i32 to index
    %c0_85 = arith.constant 0 : index
    %c0_86 = arith.constant 0 : index
    %260 = vector.load %arg11[%259, %c0_85, %c0_86] : memref<8x8x512xf32, #tpu.memory_space<vmem>>, vector<1x8x512xf32>
    %261 = vector.shape_cast %260 : vector<1x8x512xf32> to vector<8x512xf32>
    %c0_87 = arith.constant 0 : index
    %c0_88 = arith.constant 0 : index
    %262 = vector.load %arg4[%c0_87, %c0_88] : memref<128x512xf32, #tpu.memory_space<vmem>>, vector<128x512xf32>
    %cst_89 = arith.constant dense<0.000000e+00> : vector<8x512xf32>
    %263 = tpu.matmul %254, %262, %cst_89 {dimension_numbers = #tpu.dot_dimension_numbers<[1], [0], [0], [1], [0, 0, 1, 1], [], []>} : vector<8x128xf32>, vector<128x512xf32>, vector<8x512xf32> -> vector<8x512xf32>
    %264 = arith.addf %261, %263 : vector<8x512xf32>
    %265 = vector.extract_strided_slice %264 {offsets = [0, 0], sizes = [8, 128], strides = [1, 1]} : vector<8x512xf32> to vector<8x128xf32>
    %266 = arith.negf %265 : vector<8x128xf32>
    %267 = math.exp %266 : vector<8x128xf32>
    %cst_90 = arith.constant 1.000000e+00 : f32
    %268 = vector.broadcast %cst_90 : f32 to vector<8x128xf32>
    %269 = arith.addf %268, %267 : vector<8x128xf32>
    %270 = arith.divf %268, %269 : vector<8x128xf32>
    %271 = vector.extract_strided_slice %264 {offsets = [0, 128], sizes = [8, 128], strides = [1, 1]} : vector<8x512xf32> to vector<8x128xf32>
    %272 = arith.negf %271 : vector<8x128xf32>
    %273 = math.exp %272 : vector<8x128xf32>
    %cst_91 = arith.constant 1.000000e+00 : f32
    %274 = vector.broadcast %cst_91 : f32 to vector<8x128xf32>
    %275 = arith.addf %274, %273 : vector<8x128xf32>
    %276 = arith.divf %274, %275 : vector<8x128xf32>
    %277 = vector.extract_strided_slice %264 {offsets = [0, 256], sizes = [8, 128], strides = [1, 1]} : vector<8x512xf32> to vector<8x128xf32>
    %278 = math.tanh %277 : vector<8x128xf32>
    %279 = vector.extract_strided_slice %264 {offsets = [0, 384], sizes = [8, 128], strides = [1, 1]} : vector<8x512xf32> to vector<8x128xf32>
    %280 = arith.negf %279 : vector<8x128xf32>
    %281 = math.exp %280 : vector<8x128xf32>
    %cst_92 = arith.constant 1.000000e+00 : f32
    %282 = vector.broadcast %cst_92 : f32 to vector<8x128xf32>
    %283 = arith.addf %282, %281 : vector<8x128xf32>
    %284 = arith.divf %282, %283 : vector<8x128xf32>
    %285 = arith.mulf %276, %252 : vector<8x128xf32>
    %286 = arith.mulf %270, %278 : vector<8x128xf32>
    %287 = arith.addf %285, %286 : vector<8x128xf32>
    %288 = math.tanh %287 : vector<8x128xf32>
    %289 = arith.mulf %284, %288 : vector<8x128xf32>
    %290 = arith.index_cast %c7_i32 : i32 to index
    %c0_93 = arith.constant 0 : index
    %c0_94 = arith.constant 0 : index
    %291 = vector.load %arg8[%290, %c0_93, %c0_94] : memref<8x8x128xf32, #tpu.memory_space<vmem>>, vector<1x8x128xf32>
    %292 = vector.shape_cast %291 : vector<1x8x128xf32> to vector<8x128xf32>
    %293 = vector.shape_cast %289 : vector<8x128xf32> to vector<1x8x128xf32>
    tpu.vector_store %arg8[%290, %c0_93, %c0_94], %293 {strides = array<i32>} : memref<8x8x128xf32, #tpu.memory_space<vmem>>, vector<1x8x128xf32>,
    %c8_i32 = arith.constant 8 : i32
    %c0_95 = arith.constant 0 : index
    %c0_96 = arith.constant 0 : index
    %294 = vector.load %arg9[%c0_95, %c0_96] : memref<8x128xf32, #tpu.memory_space<vmem>>, vector<8x128xf32>
    tpu.vector_store %arg9[%c0_95, %c0_96], %289 {strides = array<i32>} : memref<8x128xf32, #tpu.memory_space<vmem>>, vector<8x128xf32>,
    %c0_97 = arith.constant 0 : index
    %c0_98 = arith.constant 0 : index
    %295 = vector.load %arg10[%c0_97, %c0_98] : memref<8x128xf32, #tpu.memory_space<vmem>>, vector<8x128xf32>
    tpu.vector_store %arg10[%c0_97, %c0_98], %287 {strides = array<i32>} : memref<8x128xf32, #tpu.memory_space<vmem>>, vector<8x128xf32>,
    return
  }
  func.func @transform_0(%arg0: i32, %arg1: i32) -> (i32, i32, i32) {
    %c0_i32 = arith.constant 0 : i32
    %c0_i32_0 = arith.constant 0 : i32
    return %arg1, %arg0, %c0_i32 : i32, i32, i32
  }
  func.func @transform_1(%arg0: i32, %arg1: i32) -> (i32, i32) {
    %c0_i32 = arith.constant 0 : i32
    %c0_i32_0 = arith.constant 0 : i32
    %c0_i32_1 = arith.constant 0 : i32
    return %c0_i32, %c0_i32_0 : i32, i32
  }
  func.func @transform_2(%arg0: i32, %arg1: i32) -> (i32, i32) {
    %c0_i32 = arith.constant 0 : i32
    %c0_i32_0 = arith.constant 0 : i32
    %c0_i32_1 = arith.constant 0 : i32
    return %c0_i32, %c0_i32_0 : i32, i32
  }
  func.func @transform_3(%arg0: i32, %arg1: i32) -> (i32, i32) {
    %c0_i32 = arith.constant 0 : i32
    %c0_i32_0 = arith.constant 0 : i32
    %c0_i32_1 = arith.constant 0 : i32
    return %c0_i32, %c0_i32_0 : i32, i32
  }
  func.func @transform_4(%arg0: i32, %arg1: i32) -> (i32, i32) {
    %c0_i32 = arith.constant 0 : i32
    %c0_i32_0 = arith.constant 0 : i32
    return %arg0, %c0_i32 : i32, i32
  }
  func.func @transform_5(%arg0: i32, %arg1: i32) -> (i32, i32) {
    %c0_i32 = arith.constant 0 : i32
    %c0_i32_0 = arith.constant 0 : i32
    return %arg0, %c0_i32 : i32, i32
  }
  func.func @transform_6(%arg0: i32, %arg1: i32) -> (i32, i32, i32) {
    %c0_i32 = arith.constant 0 : i32
    %c0_i32_0 = arith.constant 0 : i32
    return %arg1, %arg0, %c0_i32 : i32, i32, i32
  }
  func.func @transform_7(%arg0: i32, %arg1: i32) -> (i32, i32) {
    %c0_i32 = arith.constant 0 : i32
    %c0_i32_0 = arith.constant 0 : i32
    return %arg0, %c0_i32 : i32, i32
  }
  func.func @transform_8(%arg0: i32, %arg1: i32) -> (i32, i32) {
    %c0_i32 = arith.constant 0 : i32
    %c0_i32_0 = arith.constant 0 : i32
    return %arg0, %c0_i32 : i32, i32
  }
}

</mosaic_0001>

<bundles_post_ra>
// kernel: tpu_custom_call.1
= control target key start
LH: loop header
LB: loop body
LE: loop exit
PB: predicated region body
PF: predicated region fallthrough
CT: control target
= control target key end

     0   :  { %14 = vsyncpa [#allocation4], 0  ;;  %s3736_s0 = inlined_call_operand.hbm [shape: f32[8,8,128], index: 0, kind: input, shape index: {}]   ;;  %s3737_s1 = inlined_call_operand.hbm [shape: f32[128,512], index: 1, kind: input, shape index: {}]   ;;  %s3738_s2 = inlined_call_operand.hbm [shape: f32[128,512], index: 2, kind: input, shape index: {}]   ;;  %s3739_s3 = inlined_call_operand.hbm [shape: f32[1,512], index: 3, kind: input, shape index: {}]   ;;  %s3740_s4 = inlined_call_operand.hbm [shape: f32[8,128], index: 4, kind: input, shape index: {}]   ;;  %s3741_s5 = inlined_call_operand.vmem [shape: f32[8,128], index: 5, kind: input, shape index: {}]   ;;  %s3742_s6 = inlined_call_operand.hbm [shape: f32[8,8,128], index: 6, kind: output, shape index: {0}]   ;;  %s3743_s7 = inlined_call_operand.hbm [shape: f32[8,128], index: 7, kind: output, shape index: {1}]   ;;  %s3744_s8 = inlined_call_operand.hbm [shape: f32[8,128], index: 8, kind: output, shape index: {2}]  }
   0x1   :  { %15 = vsyncpa [#allocation7], 0 }
   0x2   :  { %16 = vsyncpa [#allocation10], 0 }
   0x3   :  { %17 = vsyncpa [#allocation5], 0 }
   0x4   :  { %18 = vsyncpa [#allocation14], 0  ;;  %s2763_s27 = smov [#allocation6]  }
   0x5   :  { %s36_s28 = sshll.u32 %s2763_s27, 4  ;;  %s37_s28 = int_to_ptr.vmem [resolvable:$true] %s36_s28 }
   0x6   :  { %s2601_s29 = scalar_lea.vmem %s37_s28, 8192  ;;  %p2606_p1 = scmp.lt.s32.totalorder %s37_s28, %s37_s28 }
   0x7   :  { %p2602_p0 = scmp.ne.s32.totalorder %s37_s28, %s2601_s29  ;;  %p2607_p2 = scmp.lt.s32.totalorder %s2601_s29, %s2601_s29 }
   0x9   :  { %p2608_p3 = por %p2607_p2, %p2606_p1 }
   0xb   :  { %p2609_p4 = pnand %p2608_p3, %p2602_p0 }
   0xd   :  { %2612 = shalt.err (!%p2609_p4)
}
   0xe   :  { %s2764_s30 = smov 512   ;;  %s2765_s9 = smov 32  }
   0xf   :  { %42 = dma.hbm_to_vmem [thread:$0]  %s3737_s1, 8192, %s37_s28, [#allocation7], %s2764_s30, %s2764_s30, %s2765_s9  }
  0x10   :  { %s2766_s12 = smov [#allocation9]   ;;  %s2767_s14 = smov [#allocation3]  }
  0x11   :  { %s61_s13 = sshll.u32 %s2766_s12, 4  ;;  %s24_s15 = sshll.u32 %s2767_s14, 4  ;;  %s62_s13 = int_to_ptr.vmem [resolvable:$true] %s61_s13  ;;  %s25_s15 = int_to_ptr.vmem [resolvable:$true] %s24_s15 }
  0x12   :  { %s2621_s16 = scalar_lea.vmem %s62_s13, 64  ;;  %p2626_p6 = scmp.lt.s32.totalorder %s62_s13, %s62_s13 }
  0x13   :  { %p2622_p5 = scmp.ne.s32.totalorder %s62_s13, %s2621_s16  ;;  %p2627_p7 = scmp.lt.s32.totalorder %s2621_s16, %s2621_s16 }
  0x15   :  { %p2628_p8 = por %p2627_p7, %p2626_p6 }
  0x17   :  { %p2629_p9 = pnand %p2628_p8, %p2622_p5 }
  0x19   :  { %2632 = shalt.err (!%p2629_p9)
}
  0x1a   :  { %64 = dma.hbm_to_vmem [thread:$0]  %s3739_s3, 64, %s62_s13, [#allocation10]  }
  0x1b   :  { %s2641_s19 = scalar_lea.vmem %s25_s15, 1024  ;;  %p2646_p11 = scmp.lt.s32.totalorder %s25_s15, %s25_s15 }
  0x1c   :  { %p2642_p10 = scmp.ne.s32.totalorder %s25_s15, %s2641_s19  ;;  %p2647_p12 = scmp.lt.s32.totalorder %s2641_s19, %s2641_s19 }
  0x1e   :  { %p2648_p13 = por %p2647_p12, %p2646_p11 }
  0x20   :  { %p2649_p0 = pnand %p2648_p13, %p2642_p10 }
  0x22   :  { %2652 = shalt.err (!%p2649_p0)
}
  0x23   :  { %s2768_s1 = smov 128   ;;  %s2769_s20 = smov 8  }
  0x24   :  { %30 = dma.hbm_to_vmem [thread:$0]  %s3736_s0, 1024, %s25_s15, [#allocation4], %s2768_s1, %s2768_s1, %s2769_s20  }
  0x25   :  { %s2770_s23 = smov [#allocation8]   ;;  %s2771_s3 = smov [#allocation11]  }
  0x26   :  { %s48_s24 = sshll.u32 %s2770_s23, 4  ;;  %s71_s25 = sshll.u32 %s2771_s3, 4  ;;  %s49_s24 = int_to_ptr.vmem [resolvable:$true] %s48_s24  ;;  %s72_s25 = int_to_ptr.vmem [resolvable:$true] %s71_s25 }
  0x27   :  { %s2661_s26 = scalar_lea.vmem %s49_s24, 8192  ;;  %p2666_p2 = scmp.lt.s32.totalorder %s49_s24, %s49_s24 }
  0x28   :  { %p2662_p1 = scmp.ne.s32.totalorder %s49_s24, %s2661_s26  ;;  %p2667_p3 = scmp.lt.s32.totalorder %s2661_s26, %s2661_s26 }
  0x2a   :  { %p2668_p4 = por %p2667_p3, %p2666_p2 }
  0x2c   :  { %p2669_p5 = pnand %p2668_p4, %p2662_p1 }
  0x2e   :  { %2672 = shalt.err (!%p2669_p5)
}
  0x2f   :  { %54 = dma.hbm_to_vmem [thread:$0]  %s3738_s2, 8192, %s49_s24, [#allocation7], %s2764_s30, %s2764_s30, %s2765_s9  }
  0x30   :  { %s2681_s0 = scalar_lea.vmem %s72_s25, 128  ;;  %p2686_p7 = scmp.lt.s32.totalorder %s72_s25, %s72_s25 }
  0x31   :  { %p2682_p6 = scmp.ne.s32.totalorder %s72_s25, %s2681_s0  ;;  %p2687_p8 = scmp.lt.s32.totalorder %s2681_s0, %s2681_s0 }
  0x33   :  { %p2688_p9 = por %p2687_p8, %p2686_p7 }
  0x35   :  { %p2689_p10 = pnand %p2688_p9, %p2682_p6 }
  0x37   :  { %2692 = shalt.err (!%p2689_p10)
}
  0x38   :  { %74 = dma.hbm_to_vmem [thread:$0]  %s3740_s4, 128, %s72_s25, [#allocation10]  }
  0x39   :  { %2753 = dma.done.wait [#allocation4], 1024  }
  0x3a   :  { %2754 = vsyncadd [#allocation4], 4294966272 }
  0x3b   :  { %2755 = dma.done.wait [#allocation7], 16384  }
  0x3c   :  { %2756 = vsyncadd [#allocation7], 4294950912 }
  0x3d   :  { %2757 = dma.done.wait [#allocation10], 192  }
  0x3e   :  { %2758 = vsyncadd [#allocation10], 4294967104  ;;  %v3745_v0 = vmov 0.0   ;;  %v169_v1 = vld [vmem:[#allocation6 + $0x1e8] sm:$0xff]  ;;  %v171_v2 = vld [vmem:[#allocation6 + $0x1f8] sm:$0xff]  ;;  %s2774_s9 = smov [#allocation12]  }
  0x3f   :  { %258 = vmatprep.mubr.f32.mxu0 %v3745_v0  ;;  %371 = vmatprep.mubr.f32.mxu1 %v3745_v0  ;;  %v168_v3 = vld [vmem:[#allocation6 + $0x1e0] sm:$0xff]  ;;  %v170_v4 = vld [vmem:[#allocation6 + $0x1f0] sm:$0xff]  ;;  %v165_v5 = vld [vmem:[#allocation6 + $0x1c8] sm:$0xff]  ;;  %s2387_s11 = sshll.u32 %s2774_s9, 4  ;;  %s2775_s12 = smov [#allocation15]   ;;  %s2388_s11 = int_to_ptr.vmem [resolvable:$true] %s2387_s11 }
  0x40   :  { %194 = vmatprep.subr.mxu0 %v169_v1  ;;  %307 = vmatprep.subr.mxu1 %v171_v2  ;;  %v167_v6 = vld [vmem:[#allocation6 + $0x1d8] sm:$0xff]  ;;  %v164_v7 = vld [vmem:[#allocation6 + $0x1c0] sm:$0xff]  ;;  %v166_v8 = vld [vmem:[#allocation6 + $0x1d0] sm:$0xff]  ;;  %s2410_s13 = sshll.u32 %s2775_s12, 4  ;;  %s2411_s13 = int_to_ptr.vmem [resolvable:$true] %s2410_s13 }
  0x41   :  { %195 = vmatpush1.msra.mxu0 %v168_v3  ;;  %308 = vmatpush1.msra.mxu1 %v170_v4  ;;  %v161_v9 = vld [vmem:[#allocation6 + $0x1a8] sm:$0xff]  ;;  %v163_v10 = vld [vmem:[#allocation6 + $0x1b8] sm:$0xff]  ;;  %v160_v11 = vld [vmem:[#allocation6 + $0x1a0] sm:$0xff] }
  0x42   :  { %196 = vmatprep.subr.mxu0 %v165_v5  ;;  %309 = vmatprep.subr.mxu1 %v167_v6  ;;  %v162_v12 = vld [vmem:[#allocation6 + $0x1b0] sm:$0xff]  ;;  %v157_v13 = vld [vmem:[#allocation6 + $0x188] sm:$0xff]  ;;  %v159_v14 = vld [vmem:[#allocation6 + $0x198] sm:$0xff] }
  0x43   :  { %197 = vmatpush1.msra.mxu0 %v164_v7  ;;  %310 = vmatpush1.msra.mxu1 %v166_v8  ;;  %v156_v15 = vld [vmem:[#allocation6 + $0x180] sm:$0xff]  ;;  %v158_v16 = vld [vmem:[#allocation6 + $0x190] sm:$0xff]  ;;  %v153_v17 = vld [vmem:[#allocation6 + $0x168] sm:$0xff] }
  0x44   :  { %198 = vmatprep.subr.mxu0 %v161_v9  ;;  %311 = vmatprep.subr.mxu1 %v163_v10  ;;  %v155_v18 = vld [vmem:[#allocation6 + $0x178] sm:$0xff]  ;;  %v152_v19 = vld [vmem:[#allocation6 + $0x160] sm:$0xff]  ;;  %v154_v20 = vld [vmem:[#allocation6 + $0x170] sm:$0xff] }
  0x45   :  { %199 = vmatpush1.msra.mxu0 %v160_v11  ;;  %312 = vmatpush1.msra.mxu1 %v162_v12  ;;  %v149_v21 = vld [vmem:[#allocation6 + $0x148] sm:$0xff]  ;;  %v151_v22 = vld [vmem:[#allocation6 + $0x158] sm:$0xff]  ;;  %v148_v23 = vld [vmem:[#allocation6 + $0x140] sm:$0xff] }
  0x46   :  { %200 = vmatprep.subr.mxu0 %v157_v13  ;;  %313 = vmatprep.subr.mxu1 %v159_v14  ;;  %v150_v24 = vld [vmem:[#allocation6 + $0x150] sm:$0xff]  ;;  %v145_v25 = vld [vmem:[#allocation6 + $0x128] sm:$0xff]  ;;  %v147_v26 = vld [vmem:[#allocation6 + $0x138] sm:$0xff] }
  0x47   :  { %201 = vmatpush1.msra.mxu0 %v156_v15  ;;  %314 = vmatpush1.msra.mxu1 %v158_v16  ;;  %v144_v27 = vld [vmem:[#allocation6 + $0x120] sm:$0xff]  ;;  %v146_v28 = vld [vmem:[#allocation6 + $0x130] sm:$0xff]  ;;  %v141_v29 = vld [vmem:[#allocation6 + $0x108] sm:$0xff] }
  0x48   :  { %202 = vmatprep.subr.mxu0 %v153_v17  ;;  %315 = vmatprep.subr.mxu1 %v155_v18  ;;  %v143_v30 = vld [vmem:[#allocation6 + $0x118] sm:$0xff]  ;;  %v140_v31 = vld [vmem:[#allocation6 + $0x100] sm:$0xff]  ;;  %v142_v32 = vld [vmem:[#allocation6 + $0x110] sm:$0xff] }
  0x49   :  { %203 = vmatpush1.msra.mxu0 %v152_v19  ;;  %316 = vmatpush1.msra.mxu1 %v154_v20  ;;  %v137_v33 = vld [vmem:[#allocation6 + $0xe8] sm:$0xff]  ;;  %v139_v34 = vld [vmem:[#allocation6 + $0xf8] sm:$0xff]  ;;  %v136_v35 = vld [vmem:[#allocation6 + $0xe0] sm:$0xff] }
  0x4a   :  { %204 = vmatprep.subr.mxu0 %v149_v21  ;;  %317 = vmatprep.subr.mxu1 %v151_v22  ;;  %v138_v36 = vld [vmem:[#allocation6 + $0xf0] sm:$0xff]  ;;  %v133_v37 = vld [vmem:[#allocation6 + $0xc8] sm:$0xff]  ;;  %v135_v38 = vld [vmem:[#allocation6 + $0xd8] sm:$0xff] }
  0x4b   :  { %205 = vmatpush1.msra.mxu0 %v148_v23  ;;  %318 = vmatpush1.msra.mxu1 %v150_v24  ;;  %v132_v39 = vld [vmem:[#allocation6 + $0xc0] sm:$0xff]  ;;  %v134_v40 = vld [vmem:[#allocation6 + $0xd0] sm:$0xff]  ;;  %v129_v41 = vld [vmem:[#allocation6 + $0xa8] sm:$0xff] }
  0x4c   :  { %206 = vmatprep.subr.mxu0 %v145_v25  ;;  %319 = vmatprep.subr.mxu1 %v147_v26  ;;  %v131_v42 = vld [vmem:[#allocation6 + $0xb8] sm:$0xff]  ;;  %v128_v43 = vld [vmem:[#allocation6 + $0xa0] sm:$0xff]  ;;  %v130_v44 = vld [vmem:[#allocation6 + $0xb0] sm:$0xff] }
  0x4d   :  { %207 = vmatpush1.msra.mxu0 %v144_v27  ;;  %320 = vmatpush1.msra.mxu1 %v146_v28  ;;  %v125_v45 = vld [vmem:[#allocation6 + $0x88] sm:$0xff]  ;;  %v127_v46 = vld [vmem:[#allocation6 + $0x98] sm:$0xff]  ;;  %v124_v47 = vld [vmem:[#allocation6 + $0x80] sm:$0xff] }
  0x4e   :  { %208 = vmatprep.subr.mxu0 %v141_v29  ;;  %321 = vmatprep.subr.mxu1 %v143_v30  ;;  %v126_v48 = vld [vmem:[#allocation6 + $0x90] sm:$0xff]  ;;  %v121_v49 = vld [vmem:[#allocation6 + $0x68] sm:$0xff]  ;;  %v123_v50 = vld [vmem:[#allocation6 + $0x78] sm:$0xff] }
  0x4f   :  { %209 = vmatpush1.msra.mxu0 %v140_v31  ;;  %322 = vmatpush1.msra.mxu1 %v142_v32  ;;  %v120_v51 = vld [vmem:[#allocation6 + $0x60] sm:$0xff]  ;;  %v122_v52 = vld [vmem:[#allocation6 + $0x70] sm:$0xff]  ;;  %v117_v53 = vld [vmem:[#allocation6 + $0x48] sm:$0xff] }
  0x50   :  { %210 = vmatprep.subr.mxu0 %v137_v33  ;;  %323 = vmatprep.subr.mxu1 %v139_v34  ;;  %v119_v54 = vld [vmem:[#allocation6 + $0x58] sm:$0xff]  ;;  %v116_v55 = vld [vmem:[#allocation6 + $0x40] sm:$0xff]  ;;  %v118_v56 = vld [vmem:[#allocation6 + $0x50] sm:$0xff] }
  0x51   :  { %211 = vmatpush1.msra.mxu0 %v136_v35  ;;  %324 = vmatpush1.msra.mxu1 %v138_v36  ;;  %v113_v57 = vld [vmem:[#allocation6 + $0x28] sm:$0xff]  ;;  %v115_v58 = vld [vmem:[#allocation6 + $0x38] sm:$0xff]  ;;  %v112_v59 = vld [vmem:[#allocation6 + $0x20] sm:$0xff] }
  0x52   :  { %212 = vmatprep.subr.mxu0 %v133_v37  ;;  %325 = vmatprep.subr.mxu1 %v135_v38  ;;  %v114_v60 = vld [vmem:[#allocation6 + $0x30] sm:$0xff]  ;;  %v109_v61 = vld [vmem:[#allocation6 + $0x8] sm:$0xff]  ;;  %v111_v62 = vld [vmem:[#allocation6 + $0x18] sm:$0xff] }
  0x53   :  { %213 = vmatpush1.msra.mxu0 %v132_v39  ;;  %326 = vmatpush1.msra.mxu1 %v134_v40  ;;  %v108_v63 = vld [vmem:[#allocation6] sm:$0xff]  ;;  %v110_v1 = vld [vmem:[#allocation6 + $0x10] sm:$0xff]  ;;  %v2847_v3 = vld [vmem:[#allocation8 + $0x1e8] sm:$0xff] }
  0x54   :  { %214 = vmatprep.subr.mxu0 %v129_v41  ;;  %327 = vmatprep.subr.mxu1 %v131_v42  ;;  %v100_v2 = vld [vmem:[#allocation3] sm:$0xff]  ;;  %v2849_v4 = vld [vmem:[#allocation8 + $0x1f8] sm:$0xff]  ;;  %v2853_v6 = vld [vmem:[#allocation8 + $0x1f0] sm:$0xff] }
  0x55   :  { %215 = vmatpush1.msra.mxu0 %v128_v43  ;;  %328 = vmatpush1.msra.mxu1 %v130_v44  ;;  %v2851_v5 = vld [vmem:[#allocation8 + $0x1e0] sm:$0xff]  ;;  %v2855_v7 = vld [vmem:[#allocation8 + $0x1c8] sm:$0xff]  ;;  %v2857_v8 = vld [vmem:[#allocation8 + $0x1d8] sm:$0xff] }
  0x56   :  { %216 = vmatprep.subr.mxu0 %v125_v45  ;;  %329 = vmatprep.subr.mxu1 %v127_v46  ;;  %v2863_v9 = vld [vmem:[#allocation8 + $0x1c0] sm:$0xff]  ;;  %v2865_v10 = vld [vmem:[#allocation8 + $0x1d0] sm:$0xff]  ;;  %v101_v11 = vld [vmem:[#allocation3 + $0x8] sm:$0xff] }
  0x57   :  { %217 = vmatpush1.msra.mxu0 %v124_v47  ;;  %330 = vmatpush1.msra.mxu1 %v126_v48  ;;  %v2871_v12 = vld [vmem:[#allocation8 + $0x1a8] sm:$0xff]  ;;  %v2873_v13 = vld [vmem:[#allocation8 + $0x1b8] sm:$0xff]  ;;  %v2877_v14 = vld [vmem:[#allocation8 + $0x1a0] sm:$0xff] }
  0x58   :  { %218 = vmatprep.subr.mxu0 %v121_v49  ;;  %331 = vmatprep.subr.mxu1 %v123_v50  ;;  %v2879_v15 = vld [vmem:[#allocation8 + $0x1b0] sm:$0xff]  ;;  %v2881_v16 = vld [vmem:[#allocation8 + $0x188] sm:$0xff]  ;;  %v2883_v17 = vld [vmem:[#allocation8 + $0x198] sm:$0xff] }
  0x59   :  { %219 = vmatpush1.msra.mxu0 %v120_v51  ;;  %332 = vmatpush1.msra.mxu1 %v122_v52  ;;  %v2889_v18 = vld [vmem:[#allocation8 + $0x180] sm:$0xff]  ;;  %v2891_v19 = vld [vmem:[#allocation8 + $0x190] sm:$0xff]  ;;  %v2897_v21 = vld [vmem:[#allocation8 + $0x168] sm:$0xff] }
  0x5a   :  { %220 = vmatprep.subr.mxu0 %v117_v53  ;;  %333 = vmatprep.subr.mxu1 %v119_v54  ;;  %v102_v20 = vld [vmem:[#allocation3 + $0x10] sm:$0xff]  ;;  %v2899_v22 = vld [vmem:[#allocation8 + $0x178] sm:$0xff]  ;;  %v2903_v23 = vld [vmem:[#allocation8 + $0x160] sm:$0xff] }
  0x5b   :  { %221 = vmatpush1.msra.mxu0 %v116_v55  ;;  %334 = vmatpush1.msra.mxu1 %v118_v56  ;;  %v2905_v24 = vld [vmem:[#allocation8 + $0x170] sm:$0xff]  ;;  %v2907_v25 = vld [vmem:[#allocation8 + $0x148] sm:$0xff]  ;;  %v2909_v26 = vld [vmem:[#allocation8 + $0x158] sm:$0xff] }
  0x5c   :  { %222 = vmatprep.subr.mxu0 %v113_v57  ;;  %335 = vmatprep.subr.mxu1 %v115_v58  ;;  %v2915_v27 = vld [vmem:[#allocation8 + $0x140] sm:$0xff]  ;;  %v2917_v28 = vld [vmem:[#allocation8 + $0x150] sm:$0xff]  ;;  %v103_v29 = vld [vmem:[#allocation3 + $0x18] sm:$0xff] }
  0x5d   :  { %223 = vmatpush1.msra.mxu0 %v112_v59  ;;  %336 = vmatpush1.msra.mxu1 %v114_v60  ;;  %v2923_v30 = vld [vmem:[#allocation8 + $0x128] sm:$0xff]  ;;  %v2925_v31 = vld [vmem:[#allocation8 + $0x138] sm:$0xff]  ;;  %v2929_v32 = vld [vmem:[#allocation8 + $0x120] sm:$0xff] }
  0x5e   :  { %224 = vmatprep.subr.mxu0 %v109_v61  ;;  %337 = vmatprep.subr.mxu1 %v111_v62  ;;  %v2931_v33 = vld [vmem:[#allocation8 + $0x130] sm:$0xff]  ;;  %v2933_v34 = vld [vmem:[#allocation8 + $0x108] sm:$0xff]  ;;  %v2935_v35 = vld [vmem:[#allocation8 + $0x118] sm:$0xff] }
  0x5f   :  { %225 = vmatpush1.msra.mxu0 %v108_v63  ;;  %338 = vmatpush1.msra.mxu1 %v110_v1  ;;  %v2941_v36 = vld [vmem:[#allocation8 + $0x100] sm:$0xff]  ;;  %v2943_v37 = vld [vmem:[#allocation8 + $0x110] sm:$0xff]  ;;  %v2949_v39 = vld [vmem:[#allocation8 + $0xe8] sm:$0xff] }
  0x60   :  { %259 = vmatmul.mubr.f32.vlgmr.msra.gmra.mxu0 %v100_v2  ;;  %372 = vmatmul.mubr.f32.vlgmr.msra.gmra.mxu1 %v100_v2  ;;  %v104_v38 = vld [vmem:[#allocation3 + $0x20] sm:$0xff]  ;;  %v2951_v40 = vld [vmem:[#allocation8 + $0xf8] sm:$0xff]  ;;  %v2957_v42 = vld [vmem:[#allocation8 + $0xf0] sm:$0xff] }
  0x61   :  { %522 = vmatprep.subr.mxu0 %v2847_v3  ;;  %593 = vmatprep.subr.mxu1 %v2849_v4  ;;  %v2955_v41 = vld [vmem:[#allocation8 + $0xe0] sm:$0xff]  ;;  %v2959_v43 = vld [vmem:[#allocation8 + $0xc8] sm:$0xff]  ;;  %v2961_v44 = vld [vmem:[#allocation8 + $0xd8] sm:$0xff] }
  0x62   :  { %523 = vmatpush1.msra.mxu0 %v2851_v5  ;;  %594 = vmatpush1.msra.mxu1 %v2853_v6  ;;  %v2967_v45 = vld [vmem:[#allocation8 + $0xc0] sm:$0xff]  ;;  %v2969_v46 = vld [vmem:[#allocation8 + $0xd0] sm:$0xff]  ;;  %v105_v47 = vld [vmem:[#allocation3 + $0x28] sm:$0xff] }
  0x63   :  { %524 = vmatprep.subr.mxu0 %v2855_v7  ;;  %595 = vmatprep.subr.mxu1 %v2857_v8  ;;  %v2975_v48 = vld [vmem:[#allocation8 + $0xa8] sm:$0xff]  ;;  %v2977_v49 = vld [vmem:[#allocation8 + $0xb8] sm:$0xff]  ;;  %v2981_v50 = vld [vmem:[#allocation8 + $0xa0] sm:$0xff] }
  0x64   :  { %264 = vmatprep.mubr.f32.mxu0 %v3745_v0  ;;  %377 = vmatprep.mubr.f32.mxu1 %v3745_v0  ;;  %v2983_v51 = vld [vmem:[#allocation8 + $0xb0] sm:$0xff]  ;;  %v2985_v52 = vld [vmem:[#allocation8 + $0x88] sm:$0xff]  ;;  %v2987_v53 = vld [vmem:[#allocation8 + $0x98] sm:$0xff] }
  0x65   :  { %525 = vmatpush1.msra.mxu0 %v2863_v9  ;;  %596 = vmatpush1.msra.mxu1 %v2865_v10  ;;  %3811 = vst [vmem:[#allocation21_spill] sm:$0xff] %v2985_v52  ;;  %3812 = vst [vmem:[#allocation22_spill] sm:$0xff] %v2987_v53  ;;  %v2993_v54 = vld [vmem:[#allocation8 + $0x80] sm:$0xff]  ;;  %v2995_v55 = vld [vmem:[#allocation8 + $0x90] sm:$0xff] }
  0x66   :  { %265 = vmatmul.mubr.f32.gmra.mxu0 %v101_v11  ;;  %378 = vmatmul.mubr.f32.gmra.mxu1 %v101_v11  ;;  %3813 = vst [vmem:[#allocation23_spill] sm:$0xff] %v2993_v54  ;;  %3814 = vst [vmem:[#allocation24_spill] sm:$0xff] %v2995_v55  ;;  %v106_v56 = vld [vmem:[#allocation3 + $0x30] sm:$0xff]  ;;  %v3001_v57 = vld [vmem:[#allocation8 + $0x68] sm:$0xff] }
  0x67   :  { %526 = vmatprep.subr.mxu0 %v2871_v12  ;;  %597 = vmatprep.subr.mxu1 %v2873_v13  ;;  %3815 = vst [vmem:[#allocation25_spill] sm:$0xff] %v3001_v57  ;;  %v3003_v58 = vld [vmem:[#allocation8 + $0x78] sm:$0xff]  ;;  %v3007_v59 = vld [vmem:[#allocation8 + $0x60] sm:$0xff]  ;;  %v3009_v60 = vld [vmem:[#allocation8 + $0x70] sm:$0xff] }
  0x68   :  { %527 = vmatpush1.msra.mxu0 %v2877_v14  ;;  %598 = vmatpush1.msra.mxu1 %v2879_v15  ;;  %3816 = vst [vmem:[#allocation26_spill] sm:$0xff] %v3003_v58  ;;  %3817 = vst [vmem:[#allocation27_spill] sm:$0xff] %v3007_v59  ;;  %v3011_v61 = vld [vmem:[#allocation8 + $0x48] sm:$0xff]  ;;  %v3013_v62 = vld [vmem:[#allocation8 + $0x58] sm:$0xff] }
  0x69   :  { %528 = vmatprep.subr.mxu0 %v2881_v16  ;;  %599 = vmatprep.subr.mxu1 %v2883_v17  ;;  %3818 = vst [vmem:[#allocation28_spill] sm:$0xff] %v3009_v60  ;;  %3819 = vst [vmem:[#allocation29_spill] sm:$0xff] %v3011_v61  ;;  %v3019_v63 = vld [vmem:[#allocation8 + $0x40] sm:$0xff]  ;;  %v3021_v1 = vld [vmem:[#allocation8 + $0x50] sm:$0xff] }
  0x6a   :  { %270 = vmatprep.mubr.f32.mxu0 %v3745_v0  ;;  %383 = vmatprep.mubr.f32.mxu1 %v3745_v0  ;;  %3820 = vst [vmem:[#allocation30_spill] sm:$0xff] %v3013_v62  ;;  %3821 = vst [vmem:[#allocation31_spill] sm:$0xff] %v3019_v63  ;;  %v107_v2 = vld [vmem:[#allocation3 + $0x38] sm:$0xff]  ;;  %v3027_v11 = vld [vmem:[#allocation8 + $0x28] sm:$0xff] }
  0x6b   :  { %529 = vmatpush1.msra.mxu0 %v2889_v18  ;;  %600 = vmatpush1.msra.mxu1 %v2891_v19  ;;  %3822 = vst [vmem:[#allocation32_spill] sm:$0xff] %v3021_v1  ;;  %3823 = vst [vmem:[#allocation33_spill] sm:$0xff] %v3027_v11 }
  0x6c   :  { %271 = vmatmul.mubr.f32.gmra.mxu0 %v102_v20  ;;  %384 = vmatmul.mubr.f32.gmra.mxu1 %v102_v20  ;;  %v3029_v20 = vld [vmem:[#allocation8 + $0x38] sm:$0xff] }
  0x6d   :  { %530 = vmatprep.subr.mxu0 %v2897_v21  ;;  %601 = vmatprep.subr.mxu1 %v2899_v22  ;;  %3824 = vst [vmem:[#allocation34_spill] sm:$0xff] %v3029_v20 }
  0x6e   :  { %531 = vmatpush1.msra.mxu0 %v2903_v23  ;;  %602 = vmatpush1.msra.mxu1 %v2905_v24 }
  0x6f   :  { %532 = vmatprep.subr.mxu0 %v2907_v25  ;;  %603 = vmatprep.subr.mxu1 %v2909_v26 }
  0x70   :  { %276 = vmatprep.mubr.f32.mxu0 %v3745_v0  ;;  %389 = vmatprep.mubr.f32.mxu1 %v3745_v0 }
  0x71   :  { %533 = vmatpush1.msra.mxu0 %v2915_v27  ;;  %604 = vmatpush1.msra.mxu1 %v2917_v28 }
  0x72   :  { %277 = vmatmul.mubr.f32.gmra.mxu0 %v103_v29  ;;  %390 = vmatmul.mubr.f32.gmra.mxu1 %v103_v29  ;;  %v3033_v29 = vld [vmem:[#allocation8 + $0x20] sm:$0xff] }
  0x73   :  { %534 = vmatprep.subr.mxu0 %v2923_v30  ;;  %605 = vmatprep.subr.mxu1 %v2925_v31  ;;  %3825 = vst [vmem:[#allocation35_spill] sm:$0xff] %v3033_v29 }
  0x74   :  { %535 = vmatpush1.msra.mxu0 %v2929_v32  ;;  %606 = vmatpush1.msra.mxu1 %v2931_v33 }
  0x75   :  { %536 = vmatprep.subr.mxu0 %v2933_v34  ;;  %607 = vmatprep.subr.mxu1 %v2935_v35 }
  0x76   :  { %282 = vmatprep.mubr.f32.mxu0 %v3745_v0  ;;  %395 = vmatprep.mubr.f32.mxu1 %v3745_v0 }
  0x77   :  { %537 = vmatpush1.msra.mxu0 %v2941_v36  ;;  %608 = vmatpush1.msra.mxu1 %v2943_v37 }
  0x78   :  { %283 = vmatmul.mubr.f32.gmra.mxu0 %v104_v38  ;;  %396 = vmatmul.mubr.f32.gmra.mxu1 %v104_v38  ;;  %v3035_v38 = vld [vmem:[#allocation8 + $0x30] sm:$0xff] }
  0x79   :  { %538 = vmatprep.subr.mxu0 %v2949_v39  ;;  %609 = vmatprep.subr.mxu1 %v2951_v40  ;;  %3826 = vst [vmem:[#allocation36_spill] sm:$0xff] %v3035_v38 }
  0x7a   :  { %539 = vmatpush1.msra.mxu0 %v2955_v41  ;;  %610 = vmatpush1.msra.mxu1 %v2957_v42 }
  0x7b   :  { %540 = vmatprep.subr.mxu0 %v2959_v43  ;;  %611 = vmatprep.subr.mxu1 %v2961_v44 }
  0x7c   :  { %288 = vmatprep.mubr.f32.mxu0 %v3745_v0  ;;  %401 = vmatprep.mubr.f32.mxu1 %v3745_v0 }
  0x7d   :  { %541 = vmatpush1.msra.mxu0 %v2967_v45  ;;  %612 = vmatpush1.msra.mxu1 %v2969_v46 }
  0x7e   :  { %289 = vmatmul.mubr.f32.gmra.mxu0 %v105_v47  ;;  %402 = vmatmul.mubr.f32.gmra.mxu1 %v105_v47  ;;  %v3037_v47 = vld [vmem:[#allocation8 + $0x8] sm:$0xff] }
  0x7f   :  { %542 = vmatprep.subr.mxu0 %v2975_v48  ;;  %613 = vmatprep.subr.mxu1 %v2977_v49  ;;  %3827 = vst [vmem:[#allocation37_spill] sm:$0xff] %v3037_v47 }
  0x80   :  { %543 = vmatpush1.msra.mxu0 %v2981_v50  ;;  %614 = vmatpush1.msra.mxu1 %v2983_v51 }
  0x81   :  { %544 = vmatprep.subr.mxu0 %v2985_v52  ;;  %615 = vmatprep.subr.mxu1 %v2987_v53 }
  0x82   :  { %294 = vmatprep.mubr.f32.mxu0 %v3745_v0  ;;  %407 = vmatprep.mubr.f32.mxu1 %v3745_v0 }
  0x83   :  { %545 = vmatpush1.msra.mxu0 %v2993_v54  ;;  %616 = vmatpush1.msra.mxu1 %v2995_v55 }
  0x84   :  { %295 = vmatmul.mubr.f32.gmra.mxu0 %v106_v56  ;;  %408 = vmatmul.mubr.f32.gmra.mxu1 %v106_v56  ;;  %v3039_v56 = vld [vmem:[#allocation8 + $0x18] sm:$0xff] }
  0x85   :  { %546 = vmatprep.subr.mxu0 %v3001_v57  ;;  %617 = vmatprep.subr.mxu1 %v3003_v58  ;;  %3828 = vst [vmem:[#allocation38_spill] sm:$0xff] %v3039_v56 }
  0x86   :  { %547 = vmatpush1.msra.mxu0 %v3007_v59  ;;  %618 = vmatpush1.msra.mxu1 %v3009_v60 }
  0x87   :  { %548 = vmatprep.subr.mxu0 %v3011_v61  ;;  %619 = vmatprep.subr.mxu1 %v3013_v62 }
  0x88   :  { %300 = vmatprep.mubr.f32.mxu0 %v3745_v0  ;;  %413 = vmatprep.mubr.f32.mxu1 %v3745_v0  ;;  %v3043_v0 = vld [vmem:[#allocation8] sm:$0xff] }
  0x89   :  { %549 = vmatpush1.msra.mxu0 %v3019_v63  ;;  %620 = vmatpush1.msra.mxu1 %v3021_v1  ;;  %3829 = vst [vmem:[#allocation39_spill] sm:$0xff] %v3043_v0  ;;  %v3047_v1 = vld [vmem:[#allocation8 + $0x10] sm:$0xff]  ;;  %v3831_v63 = vmov 0.0  }
  0x8a   :  { %301 = vmatmul.mubr.f32.gmra.mxu0 %v107_v2  ;;  %414 = vmatmul.mubr.f32.gmra.mxu1 %v107_v2  ;;  %3830 = vst [vmem:[#allocation40_spill] sm:$0xff] %v3047_v1  ;;  %v96_v2 = vld [vmem:[#allocation11] sm:$0xff] }
  0x8b   :  { %550 = vmatprep.subr.mxu0 %v3027_v11  ;;  %621 = vmatprep.subr.mxu1 %v3029_v20 }
  0x8c   :  { %551 = vmatpush1.msra.mxu0 %v3033_v29  ;;  %622 = vmatpush1.msra.mxu1 %v3035_v38 }
  0x8d   :  { %552 = vmatprep.subr.mxu0 %v3037_v47  ;;  %623 = vmatprep.subr.mxu1 %v3039_v56 }
  0x8e   :  { %553 = vmatpush1.msra.mxu0 %v3043_v0  ;;  %586 = vmatprep.mubr.f32.mxu0 %v3831_v63 }
  0x8f   :  { %624 = vmatpush1.msra.mxu1 %v3047_v1  ;;  %657 = vmatprep.mubr.f32.mxu1 %v3831_v63 }
  0x90   :  { %587 = vmatmul.mubr.f32.vlgmr.msra.gmra.mxu0 %v96_v2  ;;  %658 = vmatmul.mubr.f32.vlgmr.msra.gmra.mxu1 %v96_v2  ;;  %v3832_v2 = vld [vmem:[#allocation31_spill] sm:$0xff] }
  0x91   :  { %762 = vmatprep.subr.mxu0 %v2847_v3  ;;  %833 = vmatprep.subr.mxu1 %v2849_v4 }
  0x92   :  { %763 = vmatpush1.msra.mxu0 %v2851_v5  ;;  %834 = vmatpush1.msra.mxu1 %v2853_v6 }
  0x93   :  { %764 = vmatprep.subr.mxu0 %v2855_v7  ;;  %835 = vmatprep.subr.mxu1 %v2857_v8 }
  0x94   :  { %765 = vmatpush1.msra.mxu0 %v2863_v9  ;;  %836 = vmatpush1.msra.mxu1 %v2865_v10 }
  0x95   :  { %766 = vmatprep.subr.mxu0 %v2871_v12  ;;  %837 = vmatprep.subr.mxu1 %v2873_v13 }
  0x96   :  { %767 = vmatpush1.msra.mxu0 %v2877_v14  ;;  %838 = vmatpush1.msra.mxu1 %v2879_v15 }
  0x97   :  { %768 = vmatprep.subr.mxu0 %v2881_v16  ;;  %839 = vmatprep.subr.mxu1 %v2883_v17 }
  0x98   :  { %769 = vmatpush1.msra.mxu0 %v2889_v18  ;;  %840 = vmatpush1.msra.mxu1 %v2891_v19 }
  0x99   :  { %770 = vmatprep.subr.mxu0 %v2897_v21  ;;  %841 = vmatprep.subr.mxu1 %v2899_v22 }
  0x9a   :  { %771 = vmatpush1.msra.mxu0 %v2903_v23  ;;  %842 = vmatpush1.msra.mxu1 %v2905_v24 }
  0x9b   :  { %772 = vmatprep.subr.mxu0 %v2907_v25  ;;  %843 = vmatprep.subr.mxu1 %v2909_v26 }
  0x9c   :  { %773 = vmatpush1.msra.mxu0 %v2915_v27  ;;  %844 = vmatpush1.msra.mxu1 %v2917_v28 }
  0x9d   :  { %774 = vmatprep.subr.mxu0 %v2923_v30  ;;  %845 = vmatprep.subr.mxu1 %v2925_v31 }
  0x9e   :  { %775 = vmatpush1.msra.mxu0 %v2929_v32  ;;  %846 = vmatpush1.msra.mxu1 %v2931_v33 }
  0x9f   :  { %776 = vmatprep.subr.mxu0 %v2933_v34  ;;  %847 = vmatprep.subr.mxu1 %v2935_v35 }
  0xa0   :  { %777 = vmatpush1.msra.mxu0 %v2941_v36  ;;  %848 = vmatpush1.msra.mxu1 %v2943_v37 }
  0xa1   :  { %778 = vmatprep.subr.mxu0 %v2949_v39  ;;  %849 = vmatprep.subr.mxu1 %v2951_v40 }
  0xa2   :  { %779 = vmatpush1.msra.mxu0 %v2955_v41  ;;  %850 = vmatpush1.msra.mxu1 %v2957_v42 }
  0xa3   :  { %780 = vmatprep.subr.mxu0 %v2959_v43  ;;  %851 = vmatprep.subr.mxu1 %v2961_v44 }
  0xa4   :  { %781 = vmatpush1.msra.mxu0 %v2967_v45  ;;  %852 = vmatpush1.msra.mxu1 %v2969_v46 }
  0xa5   :  { %782 = vmatprep.subr.mxu0 %v2975_v48  ;;  %853 = vmatprep.subr.mxu1 %v2977_v49 }
  0xa6   :  { %783 = vmatpush1.msra.mxu0 %v2981_v50  ;;  %854 = vmatpush1.msra.mxu1 %v2983_v51 }
  0xa7   :  { %784 = vmatprep.subr.mxu0 %v2985_v52  ;;  %855 = vmatprep.subr.mxu1 %v2987_v53  ;;  %v3833_v52 = vld [vmem:[#allocation32_spill] sm:$0xff] }
  0xa8   :  { %785 = vmatpush1.msra.mxu0 %v2993_v54  ;;  %856 = vmatpush1.msra.mxu1 %v2995_v55 }
  0xa9   :  { %786 = vmatprep.subr.mxu0 %v3001_v57  ;;  %857 = vmatprep.subr.mxu1 %v3003_v58 }
  0xaa   :  { %787 = vmatpush1.msra.mxu0 %v3007_v59  ;;  %858 = vmatpush1.msra.mxu1 %v3009_v60 }
  0xab   :  { %788 = vmatprep.subr.mxu0 %v3011_v61  ;;  %859 = vmatprep.subr.mxu1 %v3013_v62 }
  0xac   :  { %789 = vmatpush1.msra.mxu0 %v3832_v2  ;;  %860 = vmatpush1.msra.mxu1 %v3833_v52  ;;  %v172_v52 = vld [vmem:[#allocation9] sm:$0xf] }
  0xad   :  { %790 = vmatprep.subr.mxu0 %v3027_v11  ;;  %861 = vmatprep.subr.mxu1 %v3029_v20  ;;  %v174_v20 = vlaneseq }
  0xae   :  { %791 = vmatpush1.msra.mxu0 %v3033_v29  ;;  %862 = vmatpush1.msra.mxu1 %v3035_v38 }
  0xaf   :  { %792 = vmatprep.subr.mxu0 %v3037_v47  ;;  %863 = vmatprep.subr.mxu1 %v3039_v56  ;;  %v175_v29 = vshrl.u32 %v174_v20, 7 }
  0xb0   :  { %793 = vmatpush1.msra.mxu0 %v3043_v0  ;;  %826 = vmatprep.mubr.f32.mxu0 %v3831_v63 }
  0xb1   :  { %864 = vmatpush1.msra.mxu1 %v3047_v1  ;;  %897 = vmatprep.mubr.f32.mxu1 %v3831_v63  ;;  %v176_v47 = vsub.s32 0, %v175_v29  ;;  %v184_v56 = vsub.s32 2, %v175_v29  ;;  %v180_v1 = vsub.s32 1, %v175_v29  ;;  %v188_v62 = vsub.s32 3, %v175_v29 }
  0xb2   :  { %1003 = vmatprep.subr.mxu0 %v2847_v3  ;;  %1074 = vmatprep.subr.mxu1 %v2849_v4 }
  0xb3   :  { %v177_v63 = vrot.slane %v172_v52, %v176_v47  ;;  %v3131_v61 = vrot.slane %v172_v52, %v184_v56  ;;  %v181_v60 = vrot.slane %v172_v52, %v180_v1  ;;  %v3133_v20 = vrot.slane %v172_v52, %v188_v62 }
 0x120   :  { %v3123_v11 = vpop.f32.mrf.mxu0  ;;  %v3125_v38 = vpop.f32.mrf.mxu1 }
 0x122   :  { %v3127_v0 = vpop.f32.mrf.mxu0  ;;  %v3129_v2 = vpop.f32.mrf.mxu1 }
 0x126   :  { %v266_v3 = vpop.f32.mrf.mxu0  ;;  %v379_v4 = vpop.f32.mrf.mxu1 }
 0x127   :  { %v3135_v59 = vadd.f32 %v266_v3, %v177_v63  ;;  %v3138_v58 = vadd.f32 %v379_v4, %v3131_v61 }
 0x128   :  { %v268_v57 = vpop.f32.mrf.mxu0  ;;  %v381_v55 = vpop.f32.mrf.mxu1 }
 0x129   :  { %3834 = vst [vmem:[#allocation41_spill] sm:$0xff] %v3135_v59  ;;  %3835 = vst [vmem:[#allocation42_spill] sm:$0xff] %v3138_v58  ;;  %v3140_v54 = vadd.f32 %v268_v57, %v181_v60  ;;  %v3143_v53 = vadd.f32 %v381_v55, %v3133_v20 }
 0x12b   :  { %3836 = vst [vmem:[#allocation43_spill] sm:$0xff] %v3140_v54  ;;  %3837 = vst [vmem:[#allocation44_spill] sm:$0xff] %v3143_v53 }
 0x12c   :  { %v272_v29 = vpop.f32.mrf.mxu0  ;;  %v385_v47 = vpop.f32.mrf.mxu1 }
 0x12d   :  { %v3145_v56 = vadd.f32 %v272_v29, %v177_v63  ;;  %v3148_v1 = vadd.f32 %v385_v47, %v3131_v61 }
 0x12e   :  { %v274_v52 = vpop.f32.mrf.mxu0  ;;  %v387_v62 = vpop.f32.mrf.mxu1 }
 0x12f   :  { %3838 = vst [vmem:[#allocation45_spill] sm:$0xff] %v3145_v56  ;;  %3839 = vst [vmem:[#allocation46_spill] sm:$0xff] %v3148_v1  ;;  %v3150_v3 = vadd.f32 %v274_v52, %v181_v60  ;;  %v3153_v4 = vadd.f32 %v387_v62, %v3133_v20 }
 0x131   :  { %3840 = vst [vmem:[#allocation47_spill] sm:$0xff] %v3150_v3  ;;  %3841 = vst [vmem:[#allocation48_spill] sm:$0xff] %v3153_v4 }
 0x132   :  { %v278_v58 = vpop.f32.mrf.mxu0  ;;  %v391_v57 = vpop.f32.mrf.mxu1 }
 0x133   :  { %v3155_v54 = vadd.f32 %v278_v58, %v177_v63  ;;  %v3158_v55 = vadd.f32 %v391_v57, %v3131_v61 }
 0x134   :  { %v280_v53 = vpop.f32.mrf.mxu0  ;;  %v393_v29 = vpop.f32.mrf.mxu1 }
 0x135   :  { %3842 = vst [vmem:[#allocation49_spill] sm:$0xff] %v3155_v54  ;;  %3843 = vst [vmem:[#allocation50_spill] sm:$0xff] %v3158_v55  ;;  %v3160_v56 = vadd.f32 %v280_v53, %v181_v60  ;;  %v3163_v47 = vadd.f32 %v393_v29, %v3133_v20 }
 0x137   :  { %3844 = vst [vmem:[#allocation51_spill] sm:$0xff] %v3160_v56  ;;  %3845 = vst [vmem:[#allocation52_spill] sm:$0xff] %v3163_v47 }
 0x138   :  { %v284_v1 = vpop.f32.mrf.mxu0  ;;  %v397_v52 = vpop.f32.mrf.mxu1 }
 0x139   :  { %v3165_v3 = vadd.f32 %v284_v1, %v177_v63  ;;  %v3168_v62 = vadd.f32 %v397_v52, %v3131_v61 }
 0x13a   :  { %v286_v4 = vpop.f32.mrf.mxu0  ;;  %v399_v58 = vpop.f32.mrf.mxu1 }
 0x13b   :  { %3846 = vst [vmem:[#allocation53_spill] sm:$0xff] %v3165_v3  ;;  %3847 = vst [vmem:[#allocation54_spill] sm:$0xff] %v3168_v62  ;;  %v3170_v54 = vadd.f32 %v286_v4, %v181_v60  ;;  %v3173_v57 = vadd.f32 %v399_v58, %v3133_v20 }
 0x13d   :  { %3848 = vst [vmem:[#allocation55_spill] sm:$0xff] %v3170_v54  ;;  %3849 = vst [vmem:[#allocation56_spill] sm:$0xff] %v3173_v57 }
 0x13e   :  { %v290_v55 = vpop.f32.mrf.mxu0  ;;  %v403_v53 = vpop.f32.mrf.mxu1 }
 0x13f   :  { %v3175_v56 = vadd.f32 %v290_v55, %v177_v63  ;;  %v3178_v29 = vadd.f32 %v403_v53, %v3131_v61 }
 0x140   :  { %v292_v47 = vpop.f32.mrf.mxu0  ;;  %v405_v1 = vpop.f32.mrf.mxu1 }
 0x141   :  { %3850 = vst [vmem:[#allocation57_spill] sm:$0xff] %v3175_v56  ;;  %3851 = vst [vmem:[#allocation58_spill] sm:$0xff] %v3178_v29  ;;  %v3180_v3 = vadd.f32 %v292_v47, %v181_v60  ;;  %v3183_v52 = vadd.f32 %v405_v1, %v3133_v20 }
 0x143   :  { %3852 = vst [vmem:[#allocation59_spill] sm:$0xff] %v3180_v3  ;;  %3853 = vst [vmem:[#allocation60_spill] sm:$0xff] %v3183_v52 }
 0x144   :  { %v296_v62 = vpop.f32.mrf.mxu0  ;;  %v409_v4 = vpop.f32.mrf.mxu1 }
 0x145   :  { %v3185_v54 = vadd.f32 %v296_v62, %v177_v63  ;;  %v3188_v58 = vadd.f32 %v409_v4, %v3131_v61 }
 0x146   :  { %v298_v57 = vpop.f32.mrf.mxu0  ;;  %v411_v55 = vpop.f32.mrf.mxu1 }
 0x147   :  { %3854 = vst [vmem:[#allocation61_spill] sm:$0xff] %v3185_v54  ;;  %3855 = vst [vmem:[#allocation62_spill] sm:$0xff] %v3188_v58  ;;  %v3190_v56 = vadd.f32 %v298_v57, %v181_v60  ;;  %v3193_v53 = vadd.f32 %v411_v55, %v3133_v20  ;;  %v261_v57 = vadd.f32 %v3123_v11, %v177_v63 }
 0x148   :  { %v263_v55 = vadd.f32 %v3127_v0, %v181_v60 }
 0x149   :  { %3856 = vst [vmem:[#allocation63_spill] sm:$0xff] %v3190_v56  ;;  %3857 = vst [vmem:[#allocation64_spill] sm:$0xff] %v3193_v53 }
 0x14a   :  { %v302_v29 = vpop.f32.mrf.mxu0  ;;  %v415_v47 = vpop.f32.mrf.mxu1 }
 0x14b   :  { %v3195_v3 = vadd.f32 %v302_v29, %v177_v63  ;;  %v3198_v1 = vadd.f32 %v415_v47, %v3131_v61 }
 0x14c   :  { %v304_v52 = vpop.f32.mrf.mxu0  ;;  %v417_v62 = vpop.f32.mrf.mxu1 }
 0x14d   :  { %3858 = vst [vmem:[#allocation65_spill] sm:$0xff] %v3195_v3  ;;  %3859 = vst [vmem:[#allocation66_spill] sm:$0xff] %v3198_v1  ;;  %v3200_v54 = vadd.f32 %v304_v52, %v181_v60  ;;  %v3203_v4 = vadd.f32 %v417_v62, %v3133_v20  ;;  %v376_v52 = vadd.f32 %v3129_v2, %v3133_v20  ;;  %v98_v2 = vld [vmem:[%s3741_s5] sm:$0xff]  ;;  %s2773_s5 = smov [#allocation13]  }
 0x14e   :  { %v374_v62 = vadd.f32 %v3125_v38, %v3131_v61  ;;  %s2400_s30 = sshll.u32 %s2773_s5, 4  ;;  %s2401_s30 = int_to_ptr.vmem [resolvable:$true] %s2400_s30 }
 0x14f   :  { %3860 = vst [vmem:[#allocation67_spill] sm:$0xff] %v3200_v54  ;;  %3861 = vst [vmem:[#allocation68_spill] sm:$0xff] %v3203_v4  ;;  %s2693_s14 = scalar_lea.vmem %s2401_s30, 128  ;;  %p2698_p12 = scmp.lt.s32.totalorder %s2401_s30, %s2401_s30 }
 0x150   :  { %v588_v58 = vpop.f32.mrf.mxu0  ;;  %v659_v3 = vpop.f32.mrf.mxu1  ;;  %p2694_p11 = scmp.ne.s32.totalorder %s2401_s30, %s2693_s14  ;;  %p2699_p13 = scmp.lt.s32.totalorder %s2693_s14, %s2693_s14 }
 0x151   :  { %v664_v53 = vadd.f32 %v588_v58, %v261_v57  ;;  %v666_v4 = vadd.f32 %v659_v3, %v374_v62 }
 0x152   :  { %v590_v56 = vpop.f32.mrf.mxu0  ;;  %v661_v1 = vpop.f32.mrf.mxu1  ;;  %p2700_p0 = por %p2699_p13, %p2698_p12 }
 0x153   :  { %v2428_v59 = vmul.f32 -1.442695, %v664_v53  ;;  %v665_v29 = vadd.f32 %v590_v56, %v263_v55  ;;  %v667_v54 = vadd.f32 %v661_v1, %v376_v52 }
 0x154   :  { %p2701_p1 = pnand %p2700_p0, %p2694_p11 }
 0x155   :  { %2465 = vpow2.f32 %v2428_v59  ;;  %v2429_v47 = vmul.f32 -1.442695, %v665_v29  ;;  %v2430_v63 = vmul.f32 -1.442695, %v667_v54 }
 0x157   :  { %2467 = vpow2.f32 %v2429_v47 }
 0x158   :  { %2469 = vpow2.f32 %v2430_v63 }
 0x162   :  { %v2466_v11 = vpop.eup %2465 }
 0x163   :  { %v671_v0 = vadd.f32 1.0, %v2466_v11 }
 0x164   :  { %v2468_v60 = vpop.eup %2467 }
 0x165   :  { %2471 = vrcp.f32 %v671_v0  ;;  %v677_v56 = vadd.f32 1.0, %v2468_v60  ;;  %v2470_v59 = vpop.eup %2469 }
 0x166   :  { %2473 = vtanh.f32 %v666_v4  ;;  %v684_v1 = vadd.f32 1.0, %v2470_v59  ;;  %v3293_v59 = vld [vmem:[#allocation8 + $0x1f8] sm:$0xff] }
 0x167   :  { %2475 = vrcp.f32 %v677_v56  ;;  %v3291_v56 = vld [vmem:[#allocation8 + $0x1e8] sm:$0xff] }
 0x168   :  { %2477 = vrcp.f32 %v684_v1  ;;  %v3309_v1 = vld [vmem:[#allocation8 + $0x1c0] sm:$0xff] }
 0x172   :  { %v2472_v58 = vpop.eup %2471 }
 0x173   :  { %v2474_v20 = vpop.eup %2473 }
 0x174   :  { %v2476_v53 = vpop.eup %2475  ;;  %v688_v61 = vmul.f32 %v2474_v20, %v2472_v58  ;;  %v3297_v58 = vld [vmem:[#allocation8 + $0x1e0] sm:$0xff]  ;;  %v3303_v20 = vld [vmem:[#allocation8 + $0x1c8] sm:$0xff] }
 0x175   :  { %v687_v54 = vmul.f32 %v2476_v53, %v98_v2  ;;  %v2478_v3 = vpop.eup %2477  ;;  %v3299_v2 = vld [vmem:[#allocation8 + $0x1f0] sm:$0xff]  ;;  %v3305_v53 = vld [vmem:[#allocation8 + $0x1d8] sm:$0xff] }
 0x177   :  { %v3214_v38 = vadd.f32 %v688_v61, %v687_v54  ;;  %v3311_v61 = vld [vmem:[#allocation8 + $0x1d0] sm:$0xff]  ;;  %v3315_v54 = vld [vmem:[#allocation8 + $0x1a8] sm:$0xff] }
 0x179   :  { %2479 = vtanh.f32 %v3214_v38 }
 0x186   :  { %v2480_v57 = vpop.eup %2479 }
 0x187   :  { %v691_v4 = vmul.f32 %v2480_v57, %v2478_v3  ;;  %v3321_v3 = vld [vmem:[#allocation8 + $0x1a0] sm:$0xff]  ;;  %v3323_v57 = vld [vmem:[#allocation8 + $0x1b0] sm:$0xff] }
 0x189   :  { %692 = vst [vmem:[#allocation12] sm:$0xff] %v691_v4  ;;  %827 = vmatmul.mubr.f32.vlgmr.msra.gmra.mxu0 %v691_v4  ;;  %898 = vmatmul.mubr.f32.vlgmr.msra.gmra.mxu1 %v691_v4  ;;  %v3327_v4 = vld [vmem:[#allocation8 + $0x188] sm:$0xff] }
 0x18a   :  { %1004 = vmatpush1.msra.mxu0 %v2851_v5  ;;  %1075 = vmatpush1.msra.mxu1 %v2853_v6  ;;  %v3862_v5 = vld [vmem:[#allocation21_spill] sm:$0xff]  ;;  %v3863_v6 = vld [vmem:[#allocation22_spill] sm:$0xff] }
 0x18b   :  { %1005 = vmatprep.subr.mxu0 %v2855_v7  ;;  %1076 = vmatprep.subr.mxu1 %v2857_v8  ;;  %v3864_v7 = vld [vmem:[#allocation23_spill] sm:$0xff]  ;;  %v3865_v8 = vld [vmem:[#allocation24_spill] sm:$0xff]  ;;  %3887 = vst [vmem:[#allocation21_spill] sm:$0xff] %v3291_v56  ;;  %3888 = vst [vmem:[#allocation22_spill] sm:$0xff] %v3293_v59 }
 0x18c   :  { %1006 = vmatpush1.msra.mxu0 %v2863_v9  ;;  %1077 = vmatpush1.msra.mxu1 %v2865_v10  ;;  %v3866_v9 = vld [vmem:[#allocation25_spill] sm:$0xff]  ;;  %v3867_v10 = vld [vmem:[#allocation26_spill] sm:$0xff] }
 0x18d   :  { %1007 = vmatprep.subr.mxu0 %v2871_v12  ;;  %1078 = vmatprep.subr.mxu1 %v2873_v13  ;;  %v3868_v12 = vld [vmem:[#allocation27_spill] sm:$0xff]  ;;  %v3869_v13 = vld [vmem:[#allocation28_spill] sm:$0xff] }
 0x18e   :  { %1008 = vmatpush1.msra.mxu0 %v2877_v14  ;;  %1079 = vmatpush1.msra.mxu1 %v2879_v15  ;;  %v3870_v14 = vld [vmem:[#allocation29_spill] sm:$0xff]  ;;  %v3871_v15 = vld [vmem:[#allocation30_spill] sm:$0xff] }
 0x18f   :  { %1009 = vmatprep.subr.mxu0 %v2881_v16  ;;  %1080 = vmatprep.subr.mxu1 %v2883_v17  ;;  %v3872_v16 = vld [vmem:[#allocation31_spill] sm:$0xff]  ;;  %v3873_v17 = vld [vmem:[#allocation32_spill] sm:$0xff] }
 0x190   :  { %1010 = vmatpush1.msra.mxu0 %v2889_v18  ;;  %1081 = vmatpush1.msra.mxu1 %v2891_v19  ;;  %v3874_v18 = vld [vmem:[#allocation33_spill] sm:$0xff]  ;;  %v3875_v19 = vld [vmem:[#allocation34_spill] sm:$0xff] }
 0x191   :  { %1011 = vmatprep.subr.mxu0 %v2897_v21  ;;  %1082 = vmatprep.subr.mxu1 %v2899_v22  ;;  %v3876_v21 = vld [vmem:[#allocation35_spill] sm:$0xff]  ;;  %v3877_v22 = vld [vmem:[#allocation36_spill] sm:$0xff] }
 0x192   :  { %1012 = vmatpush1.msra.mxu0 %v2903_v23  ;;  %1083 = vmatpush1.msra.mxu1 %v2905_v24  ;;  %v3878_v23 = vld [vmem:[#allocation37_spill] sm:$0xff]  ;;  %v3879_v24 = vld [vmem:[#allocation38_spill] sm:$0xff] }
 0x193   :  { %1013 = vmatprep.subr.mxu0 %v2907_v25  ;;  %1084 = vmatprep.subr.mxu1 %v2909_v26  ;;  %v3880_v25 = vld [vmem:[#allocation39_spill] sm:$0xff]  ;;  %v3881_v26 = vmov 0.0  }
 0x194   :  { %1014 = vmatpush1.msra.mxu0 %v2915_v27  ;;  %1085 = vmatpush1.msra.mxu1 %v2917_v28  ;;  %v3882_v27 = vld [vmem:[#allocation40_spill] sm:$0xff] }
 0x195   :  { %1015 = vmatprep.subr.mxu0 %v2923_v30  ;;  %1086 = vmatprep.subr.mxu1 %v2925_v31  ;;  %v3883_v30 = vld [vmem:[#allocation41_spill] sm:$0xff] }
 0x196   :  { %1016 = vmatpush1.msra.mxu0 %v2929_v32  ;;  %1087 = vmatpush1.msra.mxu1 %v2931_v33 }
 0x197   :  { %1017 = vmatprep.subr.mxu0 %v2933_v34  ;;  %1088 = vmatprep.subr.mxu1 %v2935_v35  ;;  %v3884_v34 = vld [vmem:[#allocation43_spill] sm:$0xff] }
 0x198   :  { %1018 = vmatpush1.msra.mxu0 %v2941_v36  ;;  %1089 = vmatpush1.msra.mxu1 %v2943_v37 }
 0x199   :  { %1019 = vmatprep.subr.mxu0 %v2949_v39  ;;  %1090 = vmatprep.subr.mxu1 %v2951_v40  ;;  %v3885_v40 = vld [vmem:[#allocation44_spill] sm:$0xff] }
 0x19a   :  { %1020 = vmatpush1.msra.mxu0 %v2955_v41  ;;  %1091 = vmatpush1.msra.mxu1 %v2957_v42  ;;  %v3886_v42 = vld [vmem:[#allocation42_spill] sm:$0xff] }
 0x19b   :  { %1021 = vmatprep.subr.mxu0 %v2959_v43  ;;  %1092 = vmatprep.subr.mxu1 %v2961_v44 }
 0x19c   :  { %1022 = vmatpush1.msra.mxu0 %v2967_v45  ;;  %1093 = vmatpush1.msra.mxu1 %v2969_v46 }
 0x19d   :  { %1023 = vmatprep.subr.mxu0 %v2975_v48  ;;  %1094 = vmatprep.subr.mxu1 %v2977_v49 }
 0x19e   :  { %1024 = vmatpush1.msra.mxu0 %v2981_v50  ;;  %1095 = vmatpush1.msra.mxu1 %v2983_v51 }
 0x19f   :  { %1025 = vmatprep.subr.mxu0 %v3862_v5  ;;  %1096 = vmatprep.subr.mxu1 %v3863_v6  ;;  %v3329_v5 = vld [vmem:[#allocation8 + $0x198] sm:$0xff]  ;;  %v3333_v6 = vld [vmem:[#allocation8 + $0x180] sm:$0xff] }
 0x1a0   :  { %1026 = vmatpush1.msra.mxu0 %v3864_v7  ;;  %1097 = vmatpush1.msra.mxu1 %v3865_v8  ;;  %v3335_v7 = vld [vmem:[#allocation8 + $0x190] sm:$0xff]  ;;  %v3339_v8 = vld [vmem:[#allocation8 + $0x168] sm:$0xff] }
 0x1a1   :  { %1027 = vmatprep.subr.mxu0 %v3866_v9  ;;  %1098 = vmatprep.subr.mxu1 %v3867_v10  ;;  %v3341_v9 = vld [vmem:[#allocation8 + $0x178] sm:$0xff]  ;;  %v3345_v10 = vld [vmem:[#allocation8 + $0x160] sm:$0xff] }
 0x1a2   :  { %1028 = vmatpush1.msra.mxu0 %v3868_v12  ;;  %1099 = vmatpush1.msra.mxu1 %v3869_v13  ;;  %v3347_v12 = vld [vmem:[#allocation8 + $0x170] sm:$0xff]  ;;  %v3351_v13 = vld [vmem:[#allocation8 + $0x148] sm:$0xff] }
 0x1a3   :  { %1029 = vmatprep.subr.mxu0 %v3870_v14  ;;  %1100 = vmatprep.subr.mxu1 %v3871_v15  ;;  %v3353_v14 = vld [vmem:[#allocation8 + $0x158] sm:$0xff]  ;;  %v3357_v15 = vld [vmem:[#allocation8 + $0x140] sm:$0xff] }
 0x1a4   :  { %1030 = vmatpush1.msra.mxu0 %v3872_v16  ;;  %1101 = vmatpush1.msra.mxu1 %v3873_v17  ;;  %v3359_v16 = vld [vmem:[#allocation8 + $0x150] sm:$0xff]  ;;  %v3363_v17 = vld [vmem:[#allocation8 + $0x128] sm:$0xff] }
 0x1a5   :  { %1031 = vmatprep.subr.mxu0 %v3874_v18  ;;  %1102 = vmatprep.subr.mxu1 %v3875_v19  ;;  %v3365_v18 = vld [vmem:[#allocation8 + $0x138] sm:$0xff]  ;;  %v3369_v19 = vld [vmem:[#allocation8 + $0x120] sm:$0xff] }
 0x1a6   :  { %1032 = vmatpush1.msra.mxu0 %v3876_v21  ;;  %1103 = vmatpush1.msra.mxu1 %v3877_v22  ;;  %v3371_v21 = vld [vmem:[#allocation8 + $0x130] sm:$0xff]  ;;  %v3375_v22 = vld [vmem:[#allocation8 + $0x108] sm:$0xff] }
 0x1a7   :  { %1033 = vmatprep.subr.mxu0 %v3878_v23  ;;  %1104 = vmatprep.subr.mxu1 %v3879_v24  ;;  %v3377_v23 = vld [vmem:[#allocation8 + $0x118] sm:$0xff]  ;;  %v3379_v24 = vld [vmem:[#allocation8 + $0x100] sm:$0xff] }
 0x1a8   :  { %1034 = vmatpush1.msra.mxu0 %v3880_v25  ;;  %1067 = vmatprep.mubr.f32.mxu0 %v3881_v26  ;;  %v3383_v25 = vld [vmem:[#allocation8 + $0x110] sm:$0xff] }
 0x1a9   :  { %1105 = vmatpush1.msra.mxu1 %v3882_v27  ;;  %1138 = vmatprep.mubr.f32.mxu1 %v3881_v26  ;;  %v3385_v27 = vld [vmem:[#allocation8 + $0xe8] sm:$0xff] }
 0x1aa   :  { %1244 = vmatprep.subr.mxu0 %v3291_v56  ;;  %1315 = vmatprep.subr.mxu1 %v3293_v59 }
 0x249   :  { %v828_v28 = vpop.f32.mrf.mxu0  ;;  %v899_v36 = vpop.f32.mrf.mxu1 }
 0x24a   :  { %v904_v31 = vadd.f32 %v828_v28, %v3883_v30  ;;  %v906_v43 = vadd.f32 %v899_v36, %v3886_v42  ;;  %v3387_v28 = vld [vmem:[#allocation8 + $0xf8] sm:$0xff]  ;;  %v3391_v30 = vld [vmem:[#allocation8 + $0xe0] sm:$0xff]  ;;  %v3407_v36 = vld [vmem:[#allocation8 + $0xa8] sm:$0xff] }
 0x24b   :  { %v830_v32 = vpop.f32.mrf.mxu0  ;;  %v901_v39 = vpop.f32.mrf.mxu1  ;;  %v3421_v42 = vld [vmem:[#allocation8 + $0x98] sm:$0xff] }
 0x24c   :  { %v2431_v33 = vmul.f32 -1.442695, %v904_v31  ;;  %v905_v35 = vadd.f32 %v830_v32, %v3884_v34  ;;  %v907_v41 = vadd.f32 %v901_v39, %v3885_v40  ;;  %v3393_v31 = vld [vmem:[#allocation8 + $0xf0] sm:$0xff]  ;;  %v3395_v32 = vld [vmem:[#allocation8 + $0xc8] sm:$0xff]  ;;  %v3401_v34 = vld [vmem:[#allocation8 + $0xc0] sm:$0xff] }
 0x24d   :  { %v3413_v39 = vld [vmem:[#allocation8 + $0xa0] sm:$0xff]  ;;  %v3415_v40 = vld [vmem:[#allocation8 + $0xb0] sm:$0xff] }
 0x24e   :  { %2481 = vpow2.f32 %v2431_v33  ;;  %v2432_v37 = vmul.f32 -1.442695, %v905_v35  ;;  %v2433_v44 = vmul.f32 -1.442695, %v907_v41  ;;  %v3399_v33 = vld [vmem:[#allocation8 + $0xd8] sm:$0xff]  ;;  %v3403_v35 = vld [vmem:[#allocation8 + $0xd0] sm:$0xff] }
 0x24f   :  { %v3419_v41 = vld [vmem:[#allocation8 + $0x88] sm:$0xff] }
 0x250   :  { %2483 = vpow2.f32 %v2432_v37  ;;  %v3409_v37 = vld [vmem:[#allocation8 + $0xb8] sm:$0xff] }
 0x251   :  { %2485 = vtanh.f32 %v906_v43  ;;  %v3425_v43 = vld [vmem:[#allocation8 + $0x80] sm:$0xff] }
 0x252   :  { %2487 = vpow2.f32 %v2433_v44  ;;  %v3427_v44 = vld [vmem:[#allocation8 + $0x90] sm:$0xff] }
 0x253   :  { %3889 = vst [vmem:[#allocation23_spill] sm:$0xff] %v3427_v44 }
 0x25b   :  { %v2482_v45 = vpop.eup %2481 }
 0x25c   :  { %v911_v46 = vadd.f32 1.0, %v2482_v45  ;;  %v3431_v45 = vld [vmem:[#allocation8 + $0x68] sm:$0xff] }
 0x25d   :  { %v2484_v48 = vpop.eup %2483  ;;  %3890 = vst [vmem:[#allocation24_spill] sm:$0xff] %v3431_v45 }
 0x25e   :  { %2489 = vrcp.f32 %v911_v46  ;;  %v917_v49 = vadd.f32 1.0, %v2484_v48  ;;  %v2486_v50 = vpop.eup %2485  ;;  %v3433_v46 = vld [vmem:[#allocation8 + $0x78] sm:$0xff]  ;;  %v3437_v48 = vld [vmem:[#allocation8 + $0x60] sm:$0xff] }
 0x25f   :  { %v2488_v51 = vpop.eup %2487  ;;  %3891 = vst [vmem:[#allocation25_spill] sm:$0xff] %v3433_v46  ;;  %3892 = vst [vmem:[#allocation26_spill] sm:$0xff] %v3437_v48 }
 0x260   :  { %2491 = vrcp.f32 %v917_v49  ;;  %v924_v52 = vadd.f32 1.0, %v2488_v51  ;;  %v3439_v49 = vld [vmem:[#allocation8 + $0x70] sm:$0xff]  ;;  %v3445_v51 = vld [vmem:[#allocation8 + $0x58] sm:$0xff] }
 0x261   :  { %3893 = vst [vmem:[#allocation27_spill] sm:$0xff] %v3439_v49  ;;  %3895 = vst [vmem:[#allocation29_spill] sm:$0xff] %v3445_v51 }
 0x262   :  { %2493 = vrcp.f32 %v924_v52  ;;  %v3457_v52 = vld [vmem:[#allocation8 + $0x38] sm:$0xff] }
 0x263   :  { %3899 = vst [vmem:[#allocation33_spill] sm:$0xff] %v3457_v52 }
 0x26b   :  { %v2490_v55 = vpop.eup %2489 }
 0x26c   :  { %v928_v29 = vmul.f32 %v2490_v55, %v2486_v50  ;;  %v3443_v50 = vld [vmem:[#allocation8 + $0x48] sm:$0xff]  ;;  %v3449_v55 = vld [vmem:[#allocation8 + $0x40] sm:$0xff] }
 0x26d   :  { %v2492_v47 = vpop.eup %2491  ;;  %3894 = vst [vmem:[#allocation28_spill] sm:$0xff] %v3443_v50  ;;  %3896 = vst [vmem:[#allocation30_spill] sm:$0xff] %v3449_v55 }
 0x26e   :  { %v927_v62 = vmul.f32 %v2492_v47, %v3214_v38  ;;  %v3317_v38 = vld [vmem:[#allocation8 + $0x1b8] sm:$0xff]  ;;  %v3455_v47 = vld [vmem:[#allocation8 + $0x28] sm:$0xff] }
 0x26f   :  { %v2494_v11 = vpop.eup %2493  ;;  %3898 = vst [vmem:[#allocation32_spill] sm:$0xff] %v3455_v47 }
 0x270   :  { %v3286_v63 = vadd.f32 %v928_v29, %v927_v62  ;;  %v3451_v29 = vld [vmem:[#allocation8 + $0x50] sm:$0xff]  ;;  %v3461_v62 = vld [vmem:[#allocation8 + $0x20] sm:$0xff] }
 0x271   :  { %3897 = vst [vmem:[#allocation31_spill] sm:$0xff] %v3451_v29  ;;  %3900 = vst [vmem:[#allocation34_spill] sm:$0xff] %v3461_v62 }
 0x272   :  { %2495 = vtanh.f32 %v3286_v63 }
 0x27f   :  { %v2496_v0 = vpop.eup %2495 }
 0x280   :  { %v931_v60 = vmul.f32 %v2496_v0, %v2494_v11  ;;  %v3463_v11 = vld [vmem:[#allocation8 + $0x30] sm:$0xff]  ;;  %v3467_v0 = vld [vmem:[#allocation8 + $0x8] sm:$0xff] }
 0x281   :  { %3901 = vst [vmem:[#allocation35_spill] sm:$0xff] %v3463_v11  ;;  %3902 = vst [vmem:[#allocation36_spill] sm:$0xff] %v3467_v0 }
 0x282   :  { %933 = vst [vmem:[#allocation12 + $0x8] sm:$0xff] %v931_v60  ;;  %1068 = vmatmul.mubr.f32.vlgmr.msra.gmra.mxu0 %v931_v60  ;;  %1139 = vmatmul.mubr.f32.vlgmr.msra.gmra.mxu1 %v931_v60  ;;  %v3469_v60 = vld [vmem:[#allocation8 + $0x18] sm:$0xff] }
 0x283   :  { %1308 = vmatprep.mubr.f32.mxu0 %v3881_v26  ;;  %1379 = vmatprep.mubr.f32.mxu1 %v3881_v26  ;;  %3903 = vst [vmem:[#allocation37_spill] sm:$0xff] %v3469_v60  ;;  %v3473_v26 = vld [vmem:[#allocation8] sm:$0xff] }
 0x284   :  { %1245 = vmatpush1.msra.mxu0 %v3297_v58  ;;  %1316 = vmatpush1.msra.mxu1 %v3299_v2  ;;  %3904 = vst [vmem:[#allocation38_spill] sm:$0xff] %v3473_v26 }
 0x285   :  { %1246 = vmatprep.subr.mxu0 %v3303_v20  ;;  %1317 = vmatprep.subr.mxu1 %v3305_v53 }
 0x286   :  { %1247 = vmatpush1.msra.mxu0 %v3309_v1  ;;  %1318 = vmatpush1.msra.mxu1 %v3311_v61 }
 0x287   :  { %1248 = vmatprep.subr.mxu0 %v3315_v54  ;;  %1319 = vmatprep.subr.mxu1 %v3317_v38 }
 0x288   :  { %1249 = vmatpush1.msra.mxu0 %v3321_v3  ;;  %1320 = vmatpush1.msra.mxu1 %v3323_v57 }
 0x289   :  { %1250 = vmatprep.subr.mxu0 %v3327_v4  ;;  %1321 = vmatprep.subr.mxu1 %v3329_v5 }
 0x28a   :  { %1251 = vmatpush1.msra.mxu0 %v3333_v6  ;;  %1322 = vmatpush1.msra.mxu1 %v3335_v7 }
 0x28b   :  { %1252 = vmatprep.subr.mxu0 %v3339_v8  ;;  %1323 = vmatprep.subr.mxu1 %v3341_v9 }
 0x28c   :  { %1253 = vmatpush1.msra.mxu0 %v3345_v10  ;;  %1324 = vmatpush1.msra.mxu1 %v3347_v12 }
 0x28d   :  { %1254 = vmatprep.subr.mxu0 %v3351_v13  ;;  %1325 = vmatprep.subr.mxu1 %v3353_v14 }
 0x28e   :  { %1255 = vmatpush1.msra.mxu0 %v3357_v15  ;;  %1326 = vmatpush1.msra.mxu1 %v3359_v16 }
 0x28f   :  { %1256 = vmatprep.subr.mxu0 %v3363_v17  ;;  %1327 = vmatprep.subr.mxu1 %v3365_v18 }
 0x290   :  { %1257 = vmatpush1.msra.mxu0 %v3369_v19  ;;  %1328 = vmatpush1.msra.mxu1 %v3371_v21 }
 0x291   :  { %1258 = vmatprep.subr.mxu0 %v3375_v22  ;;  %1329 = vmatprep.subr.mxu1 %v3377_v23 }
 0x292   :  { %1259 = vmatpush1.msra.mxu0 %v3379_v24  ;;  %1330 = vmatpush1.msra.mxu1 %v3383_v25 }
 0x293   :  { %1260 = vmatprep.subr.mxu0 %v3385_v27  ;;  %1331 = vmatprep.subr.mxu1 %v3387_v28 }
 0x294   :  { %1261 = vmatpush1.msra.mxu0 %v3391_v30  ;;  %1332 = vmatpush1.msra.mxu1 %v3393_v31 }
 0x295   :  { %1262 = vmatprep.subr.mxu0 %v3395_v32  ;;  %1333 = vmatprep.subr.mxu1 %v3399_v33 }
 0x296   :  { %1263 = vmatpush1.msra.mxu0 %v3401_v34  ;;  %1334 = vmatpush1.msra.mxu1 %v3403_v35 }
 0x297   :  { %1264 = vmatprep.subr.mxu0 %v3407_v36  ;;  %1335 = vmatprep.subr.mxu1 %v3409_v37 }
 0x298   :  { %1265 = vmatpush1.msra.mxu0 %v3413_v39  ;;  %1336 = vmatpush1.msra.mxu1 %v3415_v40 }
 0x299   :  { %1266 = vmatprep.subr.mxu0 %v3419_v41  ;;  %1337 = vmatprep.subr.mxu1 %v3421_v42 }
 0x29a   :  { %1267 = vmatpush1.msra.mxu0 %v3425_v43  ;;  %1338 = vmatpush1.msra.mxu1 %v3427_v44 }
 0x29b   :  { %1268 = vmatprep.subr.mxu0 %v3431_v45  ;;  %1339 = vmatprep.subr.mxu1 %v3433_v46  ;;  %v3909_v46 = vld [vmem:[#allocation46_spill] sm:$0xff] }
 0x29c   :  { %1269 = vmatpush1.msra.mxu0 %v3437_v48  ;;  %1340 = vmatpush1.msra.mxu1 %v3439_v49  ;;  %v3908_v48 = vld [vmem:[#allocation48_spill] sm:$0xff] }
 0x29d   :  { %1270 = vmatprep.subr.mxu0 %v3443_v50  ;;  %1341 = vmatprep.subr.mxu1 %v3445_v51  ;;  %v3475_v50 = vld [vmem:[#allocation8 + $0x10] sm:$0xff] }
 0x29e   :  { %1271 = vmatpush1.msra.mxu0 %v3449_v55  ;;  %1342 = vmatpush1.msra.mxu1 %v3451_v29  ;;  %3905 = vst [vmem:[#allocation39_spill] sm:$0xff] %v3475_v50 }
 0x29f   :  { %1272 = vmatprep.subr.mxu0 %v3455_v47  ;;  %1343 = vmatprep.subr.mxu1 %v3457_v52  ;;  %v3906_v47 = vld [vmem:[#allocation45_spill] sm:$0xff] }
 0x2a0   :  { %1273 = vmatpush1.msra.mxu0 %v3461_v62  ;;  %1344 = vmatpush1.msra.mxu1 %v3463_v11  ;;  %v3907_v62 = vld [vmem:[#allocation47_spill] sm:$0xff] }
 0x2a1   :  { %1274 = vmatprep.subr.mxu0 %v3467_v0  ;;  %1345 = vmatprep.subr.mxu1 %v3469_v60 }
 0x2a2   :  { %1275 = vmatpush1.msra.mxu0 %v3473_v26  ;;  %1346 = vmatpush1.msra.mxu1 %v3475_v50 }
 0x2a3   :  { %1485 = vmatprep.subr.mxu0 %v3291_v56  ;;  %1556 = vmatprep.subr.mxu1 %v3293_v59 }
 0x342   :  { %v1069_v52 = vpop.f32.mrf.mxu0  ;;  %v1140_v11 = vpop.f32.mrf.mxu1 }
 0x343   :  { %v1145_v29 = vadd.f32 %v1069_v52, %v3906_v47  ;;  %v1147_v50 = vadd.f32 %v1140_v11, %v3909_v46  ;;  %v3915_v11 = vld [vmem:[#allocation28_spill] sm:$0xff] }
 0x344   :  { %v1071_v55 = vpop.f32.mrf.mxu0  ;;  %v1142_v60 = vpop.f32.mrf.mxu1 }
 0x345   :  { %v2434_v51 = vmul.f32 -1.442695, %v1145_v29  ;;  %v1146_v49 = vadd.f32 %v1071_v55, %v3907_v62  ;;  %v1148_v26 = vadd.f32 %v1142_v60, %v3908_v48  ;;  %v3916_v60 = vld [vmem:[#allocation29_spill] sm:$0xff] }
 0x347   :  { %2497 = vpow2.f32 %v2434_v51  ;;  %v2435_v0 = vmul.f32 -1.442695, %v1146_v49  ;;  %v2436_v45 = vmul.f32 -1.442695, %v1148_v26 }
 0x349   :  { %2499 = vpow2.f32 %v2435_v0 }
 0x34a   :  { %2501 = vtanh.f32 %v1147_v50  ;;  %v3914_v50 = vld [vmem:[#allocation27_spill] sm:$0xff] }
 0x34b   :  { %2503 = vpow2.f32 %v2436_v45  ;;  %v3913_v45 = vld [vmem:[#allocation26_spill] sm:$0xff] }
 0x354   :  { %v2498_v56 = vpop.eup %2497 }
 0x355   :  { %v1152_v44 = vadd.f32 1.0, %v2498_v56 }
 0x356   :  { %v2500_v59 = vpop.eup %2499 }
 0x357   :  { %2505 = vrcp.f32 %v1152_v44  ;;  %v1158_v47 = vadd.f32 1.0, %v2500_v59  ;;  %v2502_v29 = vpop.eup %2501  ;;  %v3911_v59 = vld [vmem:[#allocation24_spill] sm:$0xff]  ;;  %v3912_v44 = vld [vmem:[#allocation25_spill] sm:$0xff] }
 0x358   :  { %v2504_v55 = vpop.eup %2503 }
 0x359   :  { %2507 = vrcp.f32 %v1158_v47  ;;  %v1165_v62 = vadd.f32 1.0, %v2504_v55  ;;  %v3917_v47 = vld [vmem:[#allocation30_spill] sm:$0xff]  ;;  %v3919_v55 = vld [vmem:[#allocation32_spill] sm:$0xff] }
 0x35b   :  { %2509 = vrcp.f32 %v1165_v62  ;;  %v3923_v62 = vld [vmem:[#allocation36_spill] sm:$0xff] }
 0x364   :  { %v2506_v51 = vpop.eup %2505 }
 0x365   :  { %v1169_v52 = vmul.f32 %v2506_v51, %v2502_v29  ;;  %v3918_v29 = vld [vmem:[#allocation31_spill] sm:$0xff]  ;;  %v3920_v51 = vld [vmem:[#allocation33_spill] sm:$0xff] }
 0x366   :  { %v2508_v49 = vpop.eup %2507 }
 0x367   :  { %v1168_v0 = vmul.f32 %v2508_v49, %v3286_v63  ;;  %v3910_v63 = vld [vmem:[#allocation23_spill] sm:$0xff] }
 0x368   :  { %v2510_v26 = vpop.eup %2509  ;;  %v3922_v49 = vld [vmem:[#allocation35_spill] sm:$0xff] }
 0x369   :  { %v3490_v48 = vadd.f32 %v1169_v52, %v1168_v0  ;;  %v3921_v52 = vld [vmem:[#allocation34_spill] sm:$0xff]  ;;  %v3924_v0 = vld [vmem:[#allocation37_spill] sm:$0xff] }
 0x36b   :  { %2511 = vtanh.f32 %v3490_v48 }
 0x378   :  { %v2512_v56 = vpop.eup %2511 }
 0x379   :  { %v1172_v46 = vmul.f32 %v2512_v56, %v2510_v26  ;;  %v3925_v26 = vld [vmem:[#allocation38_spill] sm:$0xff]  ;;  %v3926_v56 = vmov 0.0  }
 0x37b   :  { %1174 = vst [vmem:[#allocation12 + $0x10] sm:$0xff] %v1172_v46  ;;  %1309 = vmatmul.mubr.f32.vlgmr.msra.gmra.mxu0 %v1172_v46  ;;  %1380 = vmatmul.mubr.f32.vlgmr.msra.gmra.mxu1 %v1172_v46  ;;  %v3927_v46 = vld [vmem:[#allocation39_spill] sm:$0xff] }
 0x37c   :  { %1486 = vmatpush1.msra.mxu0 %v3297_v58  ;;  %1557 = vmatpush1.msra.mxu1 %v3299_v2 }
 0x37d   :  { %1487 = vmatprep.subr.mxu0 %v3303_v20  ;;  %1558 = vmatprep.subr.mxu1 %v3305_v53 }
 0x37e   :  { %1488 = vmatpush1.msra.mxu0 %v3309_v1  ;;  %1559 = vmatpush1.msra.mxu1 %v3311_v61 }
 0x37f   :  { %1489 = vmatprep.subr.mxu0 %v3315_v54  ;;  %1560 = vmatprep.subr.mxu1 %v3317_v38 }
 0x380   :  { %1490 = vmatpush1.msra.mxu0 %v3321_v3  ;;  %1561 = vmatpush1.msra.mxu1 %v3323_v57 }
 0x381   :  { %1491 = vmatprep.subr.mxu0 %v3327_v4  ;;  %1562 = vmatprep.subr.mxu1 %v3329_v5 }
 0x382   :  { %1492 = vmatpush1.msra.mxu0 %v3333_v6  ;;  %1563 = vmatpush1.msra.mxu1 %v3335_v7 }
 0x383   :  { %1493 = vmatprep.subr.mxu0 %v3339_v8  ;;  %1564 = vmatprep.subr.mxu1 %v3341_v9 }
 0x384   :  { %1494 = vmatpush1.msra.mxu0 %v3345_v10  ;;  %1565 = vmatpush1.msra.mxu1 %v3347_v12 }
 0x385   :  { %1495 = vmatprep.subr.mxu0 %v3351_v13  ;;  %1566 = vmatprep.subr.mxu1 %v3353_v14 }
 0x386   :  { %1496 = vmatpush1.msra.mxu0 %v3357_v15  ;;  %1567 = vmatpush1.msra.mxu1 %v3359_v16 }
 0x387   :  { %1497 = vmatprep.subr.mxu0 %v3363_v17  ;;  %1568 = vmatprep.subr.mxu1 %v3365_v18 }
 0x388   :  { %1498 = vmatpush1.msra.mxu0 %v3369_v19  ;;  %1569 = vmatpush1.msra.mxu1 %v3371_v21 }
 0x389   :  { %1499 = vmatprep.subr.mxu0 %v3375_v22  ;;  %1570 = vmatprep.subr.mxu1 %v3377_v23 }
 0x38a   :  { %1500 = vmatpush1.msra.mxu0 %v3379_v24  ;;  %1571 = vmatpush1.msra.mxu1 %v3383_v25 }
 0x38b   :  { %1501 = vmatprep.subr.mxu0 %v3385_v27  ;;  %1572 = vmatprep.subr.mxu1 %v3387_v28 }
 0x38c   :  { %1502 = vmatpush1.msra.mxu0 %v3391_v30  ;;  %1573 = vmatpush1.msra.mxu1 %v3393_v31 }
 0x38d   :  { %1503 = vmatprep.subr.mxu0 %v3395_v32  ;;  %1574 = vmatprep.subr.mxu1 %v3399_v33 }
 0x38e   :  { %1504 = vmatpush1.msra.mxu0 %v3401_v34  ;;  %1575 = vmatpush1.msra.mxu1 %v3403_v35 }
 0x38f   :  { %1505 = vmatprep.subr.mxu0 %v3407_v36  ;;  %1576 = vmatprep.subr.mxu1 %v3409_v37 }
 0x390   :  { %1506 = vmatpush1.msra.mxu0 %v3413_v39  ;;  %1577 = vmatpush1.msra.mxu1 %v3415_v40 }
 0x391   :  { %1507 = vmatprep.subr.mxu0 %v3419_v41  ;;  %1578 = vmatprep.subr.mxu1 %v3421_v42 }
 0x392   :  { %1508 = vmatpush1.msra.mxu0 %v3425_v43  ;;  %1579 = vmatpush1.msra.mxu1 %v3910_v63 }
 0x393   :  { %1509 = vmatprep.subr.mxu0 %v3911_v59  ;;  %1580 = vmatprep.subr.mxu1 %v3912_v44  ;;  %v3933_v44 = vld [vmem:[#allocation50_spill] sm:$0xff] }
 0x394   :  { %1510 = vmatpush1.msra.mxu0 %v3913_v45  ;;  %1581 = vmatpush1.msra.mxu1 %v3914_v50  ;;  %v3932_v45 = vld [vmem:[#allocation52_spill] sm:$0xff] }
 0x395   :  { %1511 = vmatprep.subr.mxu0 %v3915_v11  ;;  %1582 = vmatprep.subr.mxu1 %v3916_v60 }
 0x396   :  { %1512 = vmatpush1.msra.mxu0 %v3917_v47  ;;  %1583 = vmatpush1.msra.mxu1 %v3918_v29  ;;  %v3928_v29 = vld [vmem:[#allocation21_spill] sm:$0xff] }
 0x397   :  { %1513 = vmatprep.subr.mxu0 %v3919_v55  ;;  %1584 = vmatprep.subr.mxu1 %v3920_v51  ;;  %v3929_v55 = vld [vmem:[#allocation22_spill] sm:$0xff] }
 0x398   :  { %1514 = vmatpush1.msra.mxu0 %v3921_v52  ;;  %1585 = vmatpush1.msra.mxu1 %v3922_v49  ;;  %v3930_v52 = vld [vmem:[#allocation49_spill] sm:$0xff] }
 0x399   :  { %1515 = vmatprep.subr.mxu0 %v3923_v62  ;;  %1586 = vmatprep.subr.mxu1 %v3924_v0  ;;  %v3931_v62 = vld [vmem:[#allocation51_spill] sm:$0xff] }
 0x39a   :  { %1516 = vmatpush1.msra.mxu0 %v3925_v26  ;;  %1549 = vmatprep.mubr.f32.mxu0 %v3926_v56 }
 0x39b   :  { %1587 = vmatpush1.msra.mxu1 %v3927_v46  ;;  %1620 = vmatprep.mubr.f32.mxu1 %v3926_v56 }
 0x39c   :  { %1726 = vmatprep.subr.mxu0 %v3928_v29  ;;  %1797 = vmatprep.subr.mxu1 %v3929_v55 }
 0x43b   :  { %v1310_v51 = vpop.f32.mrf.mxu0  ;;  %v1381_v0 = vpop.f32.mrf.mxu1 }
 0x43c   :  { %v1386_v47 = vadd.f32 %v1310_v51, %v3930_v52  ;;  %v1388_v56 = vadd.f32 %v1381_v0, %v3933_v44  ;;  %v3938_v0 = vld [vmem:[#allocation27_spill] sm:$0xff] }
 0x43d   :  { %v1312_v49 = vpop.f32.mrf.mxu0  ;;  %v1383_v50 = vpop.f32.mrf.mxu1 }
 0x43e   :  { %v2437_v60 = vmul.f32 -1.442695, %v1386_v47  ;;  %v1387_v11 = vadd.f32 %v1312_v49, %v3931_v62  ;;  %v1389_v46 = vadd.f32 %v1383_v50, %v3932_v45 }
 0x440   :  { %2513 = vpow2.f32 %v2437_v60  ;;  %v2438_v26 = vmul.f32 -1.442695, %v1387_v11  ;;  %v2439_v59 = vmul.f32 -1.442695, %v1389_v46  ;;  %v3940_v46 = vld [vmem:[#allocation29_spill] sm:$0xff] }
 0x442   :  { %2515 = vpow2.f32 %v2438_v26 }
 0x443   :  { %2517 = vtanh.f32 %v1388_v56  ;;  %v3939_v56 = vld [vmem:[#allocation28_spill] sm:$0xff] }
 0x444   :  { %2519 = vpow2.f32 %v2439_v59  ;;  %v3936_v59 = vld [vmem:[#allocation25_spill] sm:$0xff] }
 0x44d   :  { %v2514_v29 = vpop.eup %2513 }
 0x44e   :  { %v1393_v63 = vadd.f32 1.0, %v2514_v29 }
 0x44f   :  { %v2516_v55 = vpop.eup %2515 }
 0x450   :  { %2521 = vrcp.f32 %v1393_v63  ;;  %v1399_v51 = vadd.f32 1.0, %v2516_v55  ;;  %v2518_v47 = vpop.eup %2517  ;;  %v3935_v63 = vld [vmem:[#allocation24_spill] sm:$0xff]  ;;  %v3937_v55 = vld [vmem:[#allocation26_spill] sm:$0xff] }
 0x451   :  { %v2520_v52 = vpop.eup %2519 }
 0x452   :  { %2523 = vrcp.f32 %v1399_v51  ;;  %v1406_v62 = vadd.f32 1.0, %v2520_v52  ;;  %v3941_v51 = vld [vmem:[#allocation30_spill] sm:$0xff]  ;;  %v3943_v52 = vld [vmem:[#allocation32_spill] sm:$0xff] }
 0x454   :  { %2525 = vrcp.f32 %v1406_v62  ;;  %v3947_v62 = vld [vmem:[#allocation36_spill] sm:$0xff] }
 0x45d   :  { %v2522_v60 = vpop.eup %2521 }
 0x45e   :  { %v1410_v49 = vmul.f32 %v2522_v60, %v2518_v47  ;;  %v3942_v47 = vld [vmem:[#allocation31_spill] sm:$0xff]  ;;  %v3944_v60 = vld [vmem:[#allocation33_spill] sm:$0xff] }
 0x45f   :  { %v2524_v11 = vpop.eup %2523 }
 0x460   :  { %v1409_v26 = vmul.f32 %v2524_v11, %v3490_v48  ;;  %v3934_v48 = vld [vmem:[#allocation23_spill] sm:$0xff] }
 0x461   :  { %v2526_v44 = vpop.eup %2525  ;;  %v3946_v11 = vld [vmem:[#allocation35_spill] sm:$0xff] }
 0x462   :  { %v3564_v45 = vadd.f32 %v1410_v49, %v1409_v26  ;;  %v3945_v49 = vld [vmem:[#allocation34_spill] sm:$0xff]  ;;  %v3948_v26 = vld [vmem:[#allocation37_spill] sm:$0xff] }
 0x464   :  { %2527 = vtanh.f32 %v3564_v45 }
 0x471   :  { %v2528_v50 = vpop.eup %2527 }
 0x472   :  { %v1413_v29 = vmul.f32 %v2528_v50, %v2526_v44  ;;  %v3949_v44 = vld [vmem:[#allocation38_spill] sm:$0xff]  ;;  %v3950_v50 = vmov 0.0  }
 0x474   :  { %1415 = vst [vmem:[#allocation12 + $0x18] sm:$0xff] %v1413_v29  ;;  %1550 = vmatmul.mubr.f32.vlgmr.msra.gmra.mxu0 %v1413_v29  ;;  %1621 = vmatmul.mubr.f32.vlgmr.msra.gmra.mxu1 %v1413_v29  ;;  %v3951_v29 = vld [vmem:[#allocation39_spill] sm:$0xff] }
 0x475   :  { %1727 = vmatpush1.msra.mxu0 %v3297_v58  ;;  %1798 = vmatpush1.msra.mxu1 %v3299_v2 }
 0x476   :  { %1728 = vmatprep.subr.mxu0 %v3303_v20  ;;  %1799 = vmatprep.subr.mxu1 %v3305_v53 }
 0x477   :  { %1729 = vmatpush1.msra.mxu0 %v3309_v1  ;;  %1800 = vmatpush1.msra.mxu1 %v3311_v61 }
 0x478   :  { %1730 = vmatprep.subr.mxu0 %v3315_v54  ;;  %1801 = vmatprep.subr.mxu1 %v3317_v38 }
 0x479   :  { %1731 = vmatpush1.msra.mxu0 %v3321_v3  ;;  %1802 = vmatpush1.msra.mxu1 %v3323_v57 }
 0x47a   :  { %1732 = vmatprep.subr.mxu0 %v3327_v4  ;;  %1803 = vmatprep.subr.mxu1 %v3329_v5 }
 0x47b   :  { %1733 = vmatpush1.msra.mxu0 %v3333_v6  ;;  %1804 = vmatpush1.msra.mxu1 %v3335_v7 }
 0x47c   :  { %1734 = vmatprep.subr.mxu0 %v3339_v8  ;;  %1805 = vmatprep.subr.mxu1 %v3341_v9 }
 0x47d   :  { %1735 = vmatpush1.msra.mxu0 %v3345_v10  ;;  %1806 = vmatpush1.msra.mxu1 %v3347_v12 }
 0x47e   :  { %1736 = vmatprep.subr.mxu0 %v3351_v13  ;;  %1807 = vmatprep.subr.mxu1 %v3353_v14 }
 0x47f   :  { %1737 = vmatpush1.msra.mxu0 %v3357_v15  ;;  %1808 = vmatpush1.msra.mxu1 %v3359_v16 }
 0x480   :  { %1738 = vmatprep.subr.mxu0 %v3363_v17  ;;  %1809 = vmatprep.subr.mxu1 %v3365_v18 }
 0x481   :  { %1739 = vmatpush1.msra.mxu0 %v3369_v19  ;;  %1810 = vmatpush1.msra.mxu1 %v3371_v21 }
 0x482   :  { %1740 = vmatprep.subr.mxu0 %v3375_v22  ;;  %1811 = vmatprep.subr.mxu1 %v3377_v23 }
 0x483   :  { %1741 = vmatpush1.msra.mxu0 %v3379_v24  ;;  %1812 = vmatpush1.msra.mxu1 %v3383_v25 }
 0x484   :  { %1742 = vmatprep.subr.mxu0 %v3385_v27  ;;  %1813 = vmatprep.subr.mxu1 %v3387_v28 }
 0x485   :  { %1743 = vmatpush1.msra.mxu0 %v3391_v30  ;;  %1814 = vmatpush1.msra.mxu1 %v3393_v31 }
 0x486   :  { %1744 = vmatprep.subr.mxu0 %v3395_v32  ;;  %1815 = vmatprep.subr.mxu1 %v3399_v33 }
 0x487   :  { %1745 = vmatpush1.msra.mxu0 %v3401_v34  ;;  %1816 = vmatpush1.msra.mxu1 %v3403_v35 }
 0x488   :  { %1746 = vmatprep.subr.mxu0 %v3407_v36  ;;  %1817 = vmatprep.subr.mxu1 %v3409_v37 }
 0x489   :  { %1747 = vmatpush1.msra.mxu0 %v3413_v39  ;;  %1818 = vmatpush1.msra.mxu1 %v3415_v40 }
 0x48a   :  { %1748 = vmatprep.subr.mxu0 %v3419_v41  ;;  %1819 = vmatprep.subr.mxu1 %v3421_v42 }
 0x48b   :  { %1749 = vmatpush1.msra.mxu0 %v3425_v43  ;;  %1820 = vmatpush1.msra.mxu1 %v3934_v48 }
 0x48c   :  { %1750 = vmatprep.subr.mxu0 %v3935_v63  ;;  %1821 = vmatprep.subr.mxu1 %v3936_v59  ;;  %v3957_v59 = vld [vmem:[#allocation54_spill] sm:$0xff] }
 0x48d   :  { %1751 = vmatpush1.msra.mxu0 %v3937_v55  ;;  %1822 = vmatpush1.msra.mxu1 %v3938_v0  ;;  %v3956_v55 = vld [vmem:[#allocation56_spill] sm:$0xff] }
 0x48e   :  { %1752 = vmatprep.subr.mxu0 %v3939_v56  ;;  %1823 = vmatprep.subr.mxu1 %v3940_v46 }
 0x48f   :  { %1753 = vmatpush1.msra.mxu0 %v3941_v51  ;;  %1824 = vmatpush1.msra.mxu1 %v3942_v47  ;;  %v3952_v47 = vld [vmem:[#allocation21_spill] sm:$0xff] }
 0x490   :  { %1754 = vmatprep.subr.mxu0 %v3943_v52  ;;  %1825 = vmatprep.subr.mxu1 %v3944_v60  ;;  %v3953_v52 = vld [vmem:[#allocation22_spill] sm:$0xff] }
 0x491   :  { %1755 = vmatpush1.msra.mxu0 %v3945_v49  ;;  %1826 = vmatpush1.msra.mxu1 %v3946_v11  ;;  %v3954_v49 = vld [vmem:[#allocation53_spill] sm:$0xff] }
 0x492   :  { %1756 = vmatprep.subr.mxu0 %v3947_v62  ;;  %1827 = vmatprep.subr.mxu1 %v3948_v26  ;;  %v3955_v62 = vld [vmem:[#allocation55_spill] sm:$0xff] }
 0x493   :  { %1757 = vmatpush1.msra.mxu0 %v3949_v44  ;;  %1790 = vmatprep.mubr.f32.mxu0 %v3950_v50 }
 0x494   :  { %1828 = vmatpush1.msra.mxu1 %v3951_v29  ;;  %1861 = vmatprep.mubr.f32.mxu1 %v3950_v50 }
 0x495   :  { %1967 = vmatprep.subr.mxu0 %v3952_v47  ;;  %2038 = vmatprep.subr.mxu1 %v3953_v52 }
 0x534   :  { %v1551_v60 = vpop.f32.mrf.mxu0  ;;  %v1622_v26 = vpop.f32.mrf.mxu1 }
 0x535   :  { %v1627_v51 = vadd.f32 %v1551_v60, %v3954_v49  ;;  %v1629_v50 = vadd.f32 %v1622_v26, %v3957_v59 }
 0x536   :  { %v1553_v11 = vpop.f32.mrf.mxu0  ;;  %v1624_v0 = vpop.f32.mrf.mxu1 }
 0x537   :  { %v2440_v46 = vmul.f32 -1.442695, %v1627_v51  ;;  %v1628_v56 = vadd.f32 %v1553_v11, %v3955_v62  ;;  %v1630_v29 = vadd.f32 %v1624_v0, %v3956_v55 }
 0x539   :  { %2529 = vpow2.f32 %v2440_v46  ;;  %v2441_v44 = vmul.f32 -1.442695, %v1628_v56  ;;  %v2442_v63 = vmul.f32 -1.442695, %v1630_v29  ;;  %v2207_v29 = vld [vmem:[#allocation8 + $0x1f8] sm:$0xff] }
 0x53b   :  { %2531 = vpow2.f32 %v2441_v44 }
 0x53c   :  { %2533 = vtanh.f32 %v1629_v50  ;;  %v2205_v50 = vld [vmem:[#allocation8 + $0x1e8] sm:$0xff] }
 0x53d   :  { %2535 = vpow2.f32 %v2442_v63 }
 0x546   :  { %v2530_v47 = vpop.eup %2529 }
 0x547   :  { %v1634_v48 = vadd.f32 1.0, %v2530_v47  ;;  %v2204_v47 = vld [vmem:[#allocation8 + $0x1e0] sm:$0xff] }
 0x548   :  { %v2532_v52 = vpop.eup %2531 }
 0x549   :  { %2537 = vrcp.f32 %v1634_v48  ;;  %v1640_v60 = vadd.f32 1.0, %v2532_v52  ;;  %v2534_v51 = vpop.eup %2533  ;;  %v2206_v52 = vld [vmem:[#allocation8 + $0x1f0] sm:$0xff] }
 0x54a   :  { %v2536_v49 = vpop.eup %2535 }
 0x54b   :  { %2539 = vrcp.f32 %v1640_v60  ;;  %v1647_v62 = vadd.f32 1.0, %v2536_v49  ;;  %v2201_v60 = vld [vmem:[#allocation8 + $0x1c8] sm:$0xff]  ;;  %v2200_v49 = vld [vmem:[#allocation8 + $0x1c0] sm:$0xff] }
 0x54d   :  { %2541 = vrcp.f32 %v1647_v62  ;;  %v2196_v62 = vld [vmem:[#allocation8 + $0x1a0] sm:$0xff] }
 0x556   :  { %v2538_v46 = vpop.eup %2537 }
 0x557   :  { %v1651_v11 = vmul.f32 %v2538_v46, %v2534_v51  ;;  %v2203_v51 = vld [vmem:[#allocation8 + $0x1d8] sm:$0xff]  ;;  %v2202_v46 = vld [vmem:[#allocation8 + $0x1d0] sm:$0xff] }
 0x558   :  { %v2540_v56 = vpop.eup %2539 }
 0x559   :  { %v1650_v44 = vmul.f32 %v2540_v56, %v3564_v45  ;;  %v2199_v56 = vld [vmem:[#allocation8 + $0x1b8] sm:$0xff] }
 0x55a   :  { %v2542_v59 = vpop.eup %2541 }
 0x55b   :  { %v3638_v55 = vadd.f32 %v1651_v11, %v1650_v44  ;;  %v2197_v11 = vld [vmem:[#allocation8 + $0x1a8] sm:$0xff]  ;;  %v2198_v44 = vld [vmem:[#allocation8 + $0x1b0] sm:$0xff] }
 0x55d   :  { %2543 = vtanh.f32 %v3638_v55 }
 0x56a   :  { %v2544_v0 = vpop.eup %2543 }
 0x56b   :  { %v1654_v26 = vmul.f32 %v2544_v0, %v2542_v59  ;;  %v2195_v59 = vld [vmem:[#allocation8 + $0x198] sm:$0xff]  ;;  %v2192_v0 = vld [vmem:[#allocation8 + $0x180] sm:$0xff] }
 0x56d   :  { %1656 = vst [vmem:[#allocation12 + $0x20] sm:$0xff] %v1654_v26  ;;  %1791 = vmatmul.mubr.f32.vlgmr.msra.gmra.mxu0 %v1654_v26  ;;  %1862 = vmatmul.mubr.f32.vlgmr.msra.gmra.mxu1 %v1654_v26  ;;  %v2194_v26 = vld [vmem:[#allocation8 + $0x190] sm:$0xff] }
 0x56e   :  { %1968 = vmatpush1.msra.mxu0 %v3297_v58  ;;  %2039 = vmatpush1.msra.mxu1 %v3299_v2  ;;  %v3958_v58 = vld [vmem:[#allocation23_spill] sm:$0xff]  ;;  %v3959_v2 = vld [vmem:[#allocation24_spill] sm:$0xff] }
 0x56f   :  { %1969 = vmatprep.subr.mxu0 %v3303_v20  ;;  %2040 = vmatprep.subr.mxu1 %v3305_v53  ;;  %v3960_v20 = vld [vmem:[#allocation25_spill] sm:$0xff]  ;;  %v3961_v53 = vld [vmem:[#allocation26_spill] sm:$0xff] }
 0x570   :  { %1970 = vmatpush1.msra.mxu0 %v3309_v1  ;;  %2041 = vmatpush1.msra.mxu1 %v3311_v61  ;;  %v3962_v1 = vld [vmem:[#allocation27_spill] sm:$0xff]  ;;  %v3963_v61 = vld [vmem:[#allocation28_spill] sm:$0xff] }
 0x571   :  { %1971 = vmatprep.subr.mxu0 %v3315_v54  ;;  %2042 = vmatprep.subr.mxu1 %v3317_v38  ;;  %v3964_v54 = vld [vmem:[#allocation29_spill] sm:$0xff]  ;;  %v3965_v38 = vld [vmem:[#allocation30_spill] sm:$0xff] }
 0x572   :  { %1972 = vmatpush1.msra.mxu0 %v3321_v3  ;;  %2043 = vmatpush1.msra.mxu1 %v3323_v57  ;;  %v3966_v3 = vld [vmem:[#allocation31_spill] sm:$0xff]  ;;  %v3967_v57 = vld [vmem:[#allocation32_spill] sm:$0xff] }
 0x573   :  { %1973 = vmatprep.subr.mxu0 %v3327_v4  ;;  %2044 = vmatprep.subr.mxu1 %v3329_v5  ;;  %v3968_v4 = vld [vmem:[#allocation33_spill] sm:$0xff]  ;;  %v3969_v5 = vld [vmem:[#allocation34_spill] sm:$0xff] }
 0x574   :  { %1974 = vmatpush1.msra.mxu0 %v3333_v6  ;;  %2045 = vmatpush1.msra.mxu1 %v3335_v7  ;;  %v3970_v6 = vld [vmem:[#allocation35_spill] sm:$0xff]  ;;  %v3971_v7 = vld [vmem:[#allocation36_spill] sm:$0xff] }
 0x575   :  { %1975 = vmatprep.subr.mxu0 %v3339_v8  ;;  %2046 = vmatprep.subr.mxu1 %v3341_v9  ;;  %v3972_v8 = vld [vmem:[#allocation37_spill] sm:$0xff]  ;;  %v3973_v9 = vld [vmem:[#allocation38_spill] sm:$0xff] }
 0x576   :  { %1976 = vmatpush1.msra.mxu0 %v3345_v10  ;;  %2047 = vmatpush1.msra.mxu1 %v3347_v12  ;;  %v3974_v10 = vmov 0.0   ;;  %v3975_v12 = vld [vmem:[#allocation39_spill] sm:$0xff] }
 0x577   :  { %1977 = vmatprep.subr.mxu0 %v3351_v13  ;;  %2048 = vmatprep.subr.mxu1 %v3353_v14  ;;  %v3976_v14 = vld [vmem:[#allocation57_spill] sm:$0xff] }
 0x578   :  { %1978 = vmatpush1.msra.mxu0 %v3357_v15  ;;  %2049 = vmatpush1.msra.mxu1 %v3359_v16 }
 0x579   :  { %1979 = vmatprep.subr.mxu0 %v3363_v17  ;;  %2050 = vmatprep.subr.mxu1 %v3365_v18  ;;  %v3977_v18 = vld [vmem:[#allocation59_spill] sm:$0xff] }
 0x57a   :  { %1980 = vmatpush1.msra.mxu0 %v3369_v19  ;;  %2051 = vmatpush1.msra.mxu1 %v3371_v21 }
 0x57b   :  { %1981 = vmatprep.subr.mxu0 %v3375_v22  ;;  %2052 = vmatprep.subr.mxu1 %v3377_v23 }
 0x57c   :  { %1982 = vmatpush1.msra.mxu0 %v3379_v24  ;;  %2053 = vmatpush1.msra.mxu1 %v3383_v25  ;;  %v3978_v24 = vld [vmem:[#allocation60_spill] sm:$0xff] }
 0x57d   :  { %1983 = vmatprep.subr.mxu0 %v3385_v27  ;;  %2054 = vmatprep.subr.mxu1 %v3387_v28  ;;  %v3979_v27 = vld [vmem:[#allocation58_spill] sm:$0xff] }
 0x57e   :  { %1984 = vmatpush1.msra.mxu0 %v3391_v30  ;;  %2055 = vmatpush1.msra.mxu1 %v3393_v31 }
 0x57f   :  { %1985 = vmatprep.subr.mxu0 %v3395_v32  ;;  %2056 = vmatprep.subr.mxu1 %v3399_v33 }
 0x580   :  { %1986 = vmatpush1.msra.mxu0 %v3401_v34  ;;  %2057 = vmatpush1.msra.mxu1 %v3403_v35 }
 0x581   :  { %1987 = vmatprep.subr.mxu0 %v3407_v36  ;;  %2058 = vmatprep.subr.mxu1 %v3409_v37 }
 0x582   :  { %1988 = vmatpush1.msra.mxu0 %v3413_v39  ;;  %2059 = vmatpush1.msra.mxu1 %v3415_v40 }
 0x583   :  { %1989 = vmatprep.subr.mxu0 %v3419_v41  ;;  %2060 = vmatprep.subr.mxu1 %v3421_v42 }
 0x584   :  { %1990 = vmatpush1.msra.mxu0 %v3425_v43  ;;  %2061 = vmatpush1.msra.mxu1 %v3958_v58  ;;  %v2189_v58 = vld [vmem:[#allocation8 + $0x168] sm:$0xff] }
 0x585   :  { %1991 = vmatprep.subr.mxu0 %v3959_v2  ;;  %2062 = vmatprep.subr.mxu1 %v3960_v20  ;;  %v2191_v2 = vld [vmem:[#allocation8 + $0x178] sm:$0xff]  ;;  %v2188_v20 = vld [vmem:[#allocation8 + $0x160] sm:$0xff] }
 0x586   :  { %1992 = vmatpush1.msra.mxu0 %v3961_v53  ;;  %2063 = vmatpush1.msra.mxu1 %v3962_v1  ;;  %v2190_v53 = vld [vmem:[#allocation8 + $0x170] sm:$0xff]  ;;  %v2185_v1 = vld [vmem:[#allocation8 + $0x148] sm:$0xff] }
 0x587   :  { %1993 = vmatprep.subr.mxu0 %v3963_v61  ;;  %2064 = vmatprep.subr.mxu1 %v3964_v54  ;;  %v2187_v61 = vld [vmem:[#allocation8 + $0x158] sm:$0xff]  ;;  %v2184_v54 = vld [vmem:[#allocation8 + $0x140] sm:$0xff] }
 0x588   :  { %1994 = vmatpush1.msra.mxu0 %v3965_v38  ;;  %2065 = vmatpush1.msra.mxu1 %v3966_v3  ;;  %v2186_v38 = vld [vmem:[#allocation8 + $0x150] sm:$0xff]  ;;  %v2181_v3 = vld [vmem:[#allocation8 + $0x128] sm:$0xff] }
 0x589   :  { %1995 = vmatprep.subr.mxu0 %v3967_v57  ;;  %2066 = vmatprep.subr.mxu1 %v3968_v4  ;;  %v2183_v57 = vld [vmem:[#allocation8 + $0x138] sm:$0xff]  ;;  %v2180_v4 = vld [vmem:[#allocation8 + $0x120] sm:$0xff] }
 0x58a   :  { %1996 = vmatpush1.msra.mxu0 %v3969_v5  ;;  %2067 = vmatpush1.msra.mxu1 %v3970_v6  ;;  %v2182_v5 = vld [vmem:[#allocation8 + $0x130] sm:$0xff]  ;;  %v2177_v6 = vld [vmem:[#allocation8 + $0x108] sm:$0xff] }
 0x58b   :  { %1997 = vmatprep.subr.mxu0 %v3971_v7  ;;  %2068 = vmatprep.subr.mxu1 %v3972_v8  ;;  %v2179_v7 = vld [vmem:[#allocation8 + $0x118] sm:$0xff]  ;;  %v2176_v8 = vld [vmem:[#allocation8 + $0x100] sm:$0xff] }
 0x58c   :  { %1998 = vmatpush1.msra.mxu0 %v3973_v9  ;;  %2031 = vmatprep.mubr.f32.mxu0 %v3974_v10  ;;  %v2178_v9 = vld [vmem:[#allocation8 + $0x110] sm:$0xff] }
 0x58d   :  { %2069 = vmatpush1.msra.mxu1 %v3975_v12  ;;  %2102 = vmatprep.mubr.f32.mxu1 %v3974_v10  ;;  %v2175_v12 = vld [vmem:[#allocation8 + $0xf8] sm:$0xff] }
 0x58e   :  { %2208 = vmatprep.subr.mxu0 %v2205_v50  ;;  %2279 = vmatprep.subr.mxu1 %v2207_v29  ;;  %v2146_v50 = vld [vmem:[#allocation8 + $0x10] sm:$0xff] }
 0x62d   :  { %v1792_v13 = vpop.f32.mrf.mxu0  ;;  %v1863_v21 = vpop.f32.mrf.mxu1 }
 0x62e   :  { %v1868_v15 = vadd.f32 %v1792_v13, %v3976_v14  ;;  %v1870_v28 = vadd.f32 %v1863_v21, %v3979_v27  ;;  %v2172_v13 = vld [vmem:[#allocation8 + $0xe0] sm:$0xff]  ;;  %v2174_v14 = vld [vmem:[#allocation8 + $0xf0] sm:$0xff]  ;;  %v2167_v21 = vld [vmem:[#allocation8 + $0xb8] sm:$0xff] }
 0x62f   :  { %v1794_v16 = vpop.f32.mrf.mxu0  ;;  %v1865_v23 = vpop.f32.mrf.mxu1  ;;  %v2160_v27 = vld [vmem:[#allocation8 + $0x80] sm:$0xff] }
 0x630   :  { %v2443_v17 = vmul.f32 -1.442695, %v1868_v15  ;;  %v1869_v19 = vadd.f32 %v1794_v16, %v3977_v18  ;;  %v1871_v25 = vadd.f32 %v1865_v23, %v3978_v24  ;;  %v2169_v15 = vld [vmem:[#allocation8 + $0xc8] sm:$0xff]  ;;  %v2171_v16 = vld [vmem:[#allocation8 + $0xd8] sm:$0xff]  ;;  %v2170_v18 = vld [vmem:[#allocation8 + $0xd0] sm:$0xff] }
 0x631   :  { %v2166_v23 = vld [vmem:[#allocation8 + $0xb0] sm:$0xff]  ;;  %v2161_v24 = vld [vmem:[#allocation8 + $0x88] sm:$0xff] }
 0x632   :  { %2545 = vpow2.f32 %v2443_v17  ;;  %v2444_v22 = vmul.f32 -1.442695, %v1869_v19  ;;  %v2445_v30 = vmul.f32 -1.442695, %v1871_v25  ;;  %v2168_v17 = vld [vmem:[#allocation8 + $0xc0] sm:$0xff]  ;;  %v2165_v19 = vld [vmem:[#allocation8 + $0xa8] sm:$0xff] }
 0x633   :  { %v2163_v25 = vld [vmem:[#allocation8 + $0x98] sm:$0xff] }
 0x634   :  { %2547 = vpow2.f32 %v2444_v22  ;;  %v2164_v22 = vld [vmem:[#allocation8 + $0xa0] sm:$0xff] }
 0x635   :  { %2549 = vtanh.f32 %v1870_v28  ;;  %v2162_v28 = vld [vmem:[#allocation8 + $0x90] sm:$0xff] }
 0x636   :  { %2551 = vpow2.f32 %v2445_v30  ;;  %v2157_v30 = vld [vmem:[#allocation8 + $0x68] sm:$0xff] }
 0x63f   :  { %v2546_v31 = vpop.eup %2545 }
 0x640   :  { %v1875_v32 = vadd.f32 1.0, %v2546_v31  ;;  %v2159_v31 = vld [vmem:[#allocation8 + $0x78] sm:$0xff] }
 0x641   :  { %v2548_v33 = vpop.eup %2547 }
 0x642   :  { %2553 = vrcp.f32 %v1875_v32  ;;  %v1881_v34 = vadd.f32 1.0, %v2548_v33  ;;  %v2550_v35 = vpop.eup %2549  ;;  %v2156_v32 = vld [vmem:[#allocation8 + $0x60] sm:$0xff]  ;;  %v2158_v33 = vld [vmem:[#allocation8 + $0x70] sm:$0xff] }
 0x643   :  { %v2552_v36 = vpop.eup %2551 }
 0x644   :  { %2555 = vrcp.f32 %v1881_v34  ;;  %v1888_v41 = vadd.f32 1.0, %v2552_v36  ;;  %v2153_v34 = vld [vmem:[#allocation8 + $0x48] sm:$0xff]  ;;  %v2152_v36 = vld [vmem:[#allocation8 + $0x40] sm:$0xff] }
 0x646   :  { %2557 = vrcp.f32 %v1888_v41  ;;  %v2148_v41 = vld [vmem:[#allocation8 + $0x20] sm:$0xff] }
 0x64f   :  { %v2554_v37 = vpop.eup %2553 }
 0x650   :  { %v1892_v39 = vmul.f32 %v2554_v37, %v2550_v35  ;;  %v2155_v35 = vld [vmem:[#allocation8 + $0x58] sm:$0xff]  ;;  %v2154_v37 = vld [vmem:[#allocation8 + $0x50] sm:$0xff] }
 0x651   :  { %v2556_v40 = vpop.eup %2555 }
 0x652   :  { %v1891_v42 = vmul.f32 %v2556_v40, %v3638_v55  ;;  %v2193_v55 = vld [vmem:[#allocation8 + $0x188] sm:$0xff]  ;;  %v2151_v40 = vld [vmem:[#allocation8 + $0x38] sm:$0xff] }
 0x653   :  { %v2558_v45 = vpop.eup %2557 }
 0x654   :  { %v3710_v43 = vadd.f32 %v1892_v39, %v1891_v42  ;;  %v2149_v39 = vld [vmem:[#allocation8 + $0x28] sm:$0xff]  ;;  %v2150_v42 = vld [vmem:[#allocation8 + $0x30] sm:$0xff] }
 0x656   :  { %2559 = vtanh.f32 %v3710_v43 }
 0x663   :  { %v2560_v48 = vpop.eup %2559 }
 0x664   :  { %v1895_v63 = vmul.f32 %v2560_v48, %v2558_v45  ;;  %v2145_v45 = vld [vmem:[#allocation8 + $0x8] sm:$0xff]  ;;  %v2147_v48 = vld [vmem:[#allocation8 + $0x18] sm:$0xff] }
 0x666   :  { %1897 = vst [vmem:[#allocation12 + $0x28] sm:$0xff] %v1895_v63  ;;  %2032 = vmatmul.mubr.f32.vlgmr.msra.gmra.mxu0 %v1895_v63  ;;  %2103 = vmatmul.mubr.f32.vlgmr.msra.gmra.mxu1 %v1895_v63  ;;  %v2144_v63 = vld [vmem:[#allocation8] sm:$0xff] }
 0x667   :  { %2272 = vmatprep.mubr.f32.mxu0 %v3974_v10  ;;  %2343 = vmatprep.mubr.f32.mxu1 %v3974_v10  ;;  %v2173_v10 = vld [vmem:[#allocation8 + $0xe8] sm:$0xff] }
 0x668   :  { %2209 = vmatpush1.msra.mxu0 %v2204_v47  ;;  %2280 = vmatpush1.msra.mxu1 %v2206_v52  ;;  %v3980_v47 = vld [vmem:[#allocation61_spill] sm:$0xff] }
 0x669   :  { %2210 = vmatprep.subr.mxu0 %v2201_v60  ;;  %2281 = vmatprep.subr.mxu1 %v2203_v51 }
 0x66a   :  { %2211 = vmatpush1.msra.mxu0 %v2200_v49  ;;  %2282 = vmatpush1.msra.mxu1 %v2202_v46  ;;  %v3981_v49 = vld [vmem:[#allocation63_spill] sm:$0xff] }
 0x66b   :  { %2212 = vmatprep.subr.mxu0 %v2197_v11  ;;  %2283 = vmatprep.subr.mxu1 %v2199_v56 }
 0x66c   :  { %2213 = vmatpush1.msra.mxu0 %v2196_v62  ;;  %2284 = vmatpush1.msra.mxu1 %v2198_v44  ;;  %v3982_v44 = vld [vmem:[#allocation64_spill] sm:$0xff] }
 0x66d   :  { %2214 = vmatprep.subr.mxu0 %v2193_v55  ;;  %2285 = vmatprep.subr.mxu1 %v2195_v59  ;;  %v3983_v59 = vld [vmem:[#allocation62_spill] sm:$0xff] }
 0x66e   :  { %2215 = vmatpush1.msra.mxu0 %v2192_v0  ;;  %2286 = vmatpush1.msra.mxu1 %v2194_v26 }
 0x66f   :  { %2216 = vmatprep.subr.mxu0 %v2189_v58  ;;  %2287 = vmatprep.subr.mxu1 %v2191_v2 }
 0x670   :  { %2217 = vmatpush1.msra.mxu0 %v2188_v20  ;;  %2288 = vmatpush1.msra.mxu1 %v2190_v53 }
 0x671   :  { %2218 = vmatprep.subr.mxu0 %v2185_v1  ;;  %2289 = vmatprep.subr.mxu1 %v2187_v61 }
 0x672   :  { %2219 = vmatpush1.msra.mxu0 %v2184_v54  ;;  %2290 = vmatpush1.msra.mxu1 %v2186_v38 }
 0x673   :  { %2220 = vmatprep.subr.mxu0 %v2181_v3  ;;  %2291 = vmatprep.subr.mxu1 %v2183_v57 }
 0x674   :  { %2221 = vmatpush1.msra.mxu0 %v2180_v4  ;;  %2292 = vmatpush1.msra.mxu1 %v2182_v5 }
 0x675   :  { %2222 = vmatprep.subr.mxu0 %v2177_v6  ;;  %2293 = vmatprep.subr.mxu1 %v2179_v7 }
 0x676   :  { %2223 = vmatpush1.msra.mxu0 %v2176_v8  ;;  %2294 = vmatpush1.msra.mxu1 %v2178_v9 }
 0x677   :  { %2224 = vmatprep.subr.mxu0 %v2173_v10  ;;  %2295 = vmatprep.subr.mxu1 %v2175_v12  ;;  %v3984_v10 = vld [vmem:[#allocation65_spill] sm:$0xff] }
 0x678   :  { %2225 = vmatpush1.msra.mxu0 %v2172_v13  ;;  %2296 = vmatpush1.msra.mxu1 %v2174_v14 }
 0x679   :  { %2226 = vmatprep.subr.mxu0 %v2169_v15  ;;  %2297 = vmatprep.subr.mxu1 %v2171_v16  ;;  %v3985_v15 = vld [vmem:[#allocation67_spill] sm:$0xff] }
 0x67a   :  { %2227 = vmatpush1.msra.mxu0 %v2168_v17  ;;  %2298 = vmatpush1.msra.mxu1 %v2170_v18 }
 0x67b   :  { %2228 = vmatprep.subr.mxu0 %v2165_v19  ;;  %2299 = vmatprep.subr.mxu1 %v2167_v21  ;;  %v3986_v19 = vld [vmem:[#allocation68_spill] sm:$0xff] }
 0x67c   :  { %2229 = vmatpush1.msra.mxu0 %v2164_v22  ;;  %2300 = vmatpush1.msra.mxu1 %v2166_v23  ;;  %v3987_v22 = vld [vmem:[#allocation66_spill] sm:$0xff] }
 0x67d   :  { %2230 = vmatprep.subr.mxu0 %v2161_v24  ;;  %2301 = vmatprep.subr.mxu1 %v2163_v25 }
 0x67e   :  { %2231 = vmatpush1.msra.mxu0 %v2160_v27  ;;  %2302 = vmatpush1.msra.mxu1 %v2162_v28 }
 0x67f   :  { %2232 = vmatprep.subr.mxu0 %v2157_v30  ;;  %2303 = vmatprep.subr.mxu1 %v2159_v31 }
 0x680   :  { %2233 = vmatpush1.msra.mxu0 %v2156_v32  ;;  %2304 = vmatpush1.msra.mxu1 %v2158_v33 }
 0x681   :  { %2234 = vmatprep.subr.mxu0 %v2153_v34  ;;  %2305 = vmatprep.subr.mxu1 %v2155_v35 }
 0x682   :  { %2235 = vmatpush1.msra.mxu0 %v2152_v36  ;;  %2306 = vmatpush1.msra.mxu1 %v2154_v37 }
 0x683   :  { %2236 = vmatprep.subr.mxu0 %v2149_v39  ;;  %2307 = vmatprep.subr.mxu1 %v2151_v40 }
 0x684   :  { %2237 = vmatpush1.msra.mxu0 %v2148_v41  ;;  %2308 = vmatpush1.msra.mxu1 %v2150_v42 }
 0x685   :  { %2238 = vmatprep.subr.mxu0 %v2145_v45  ;;  %2309 = vmatprep.subr.mxu1 %v2147_v48 }
 0x686   :  { %2239 = vmatpush1.msra.mxu0 %v2144_v63  ;;  %2310 = vmatpush1.msra.mxu1 %v2146_v50 }
 0x726   :  { %v2033_v29 = vpop.f32.mrf.mxu0  ;;  %v2104_v11 = vpop.f32.mrf.mxu1 }
 0x727   :  { %v2109_v52 = vadd.f32 %v2033_v29, %v3980_v47  ;;  %v2111_v0 = vadd.f32 %v2104_v11, %v3983_v59 }
 0x728   :  { %v2035_v60 = vpop.f32.mrf.mxu0  ;;  %v2106_v62 = vpop.f32.mrf.mxu1 }
 0x729   :  { %v2446_v51 = vmul.f32 -1.442695, %v2109_v52  ;;  %v2110_v46 = vadd.f32 %v2035_v60, %v3981_v49  ;;  %v2112_v55 = vadd.f32 %v2106_v62, %v3982_v44 }
 0x72b   :  { %2561 = vpow2.f32 %v2446_v51  ;;  %v2447_v56 = vmul.f32 -1.442695, %v2110_v46  ;;  %v2448_v26 = vmul.f32 -1.442695, %v2112_v55 }
 0x72d   :  { %2563 = vpow2.f32 %v2447_v56 }
 0x72e   :  { %2565 = vtanh.f32 %v2111_v0 }
 0x72f   :  { %2567 = vpow2.f32 %v2448_v26 }
 0x738   :  { %v2562_v58 = vpop.eup %2561 }
 0x739   :  { %v2116_v2 = vadd.f32 1.0, %v2562_v58 }
 0x73a   :  { %v2564_v20 = vpop.eup %2563 }
 0x73b   :  { %2569 = vrcp.f32 %v2116_v2  ;;  %v2122_v53 = vadd.f32 1.0, %v2564_v20  ;;  %v2566_v1 = vpop.eup %2565 }
 0x73c   :  { %v2568_v61 = vpop.eup %2567 }
 0x73d   :  { %2571 = vrcp.f32 %v2122_v53  ;;  %v2129_v57 = vadd.f32 1.0, %v2568_v61 }
 0x73f   :  { %2573 = vrcp.f32 %v2129_v57 }
 0x748   :  { %v2570_v54 = vpop.eup %2569 }
 0x749   :  { %v2133_v38 = vmul.f32 %v2570_v54, %v2566_v1 }
 0x74a   :  { %v2572_v3 = vpop.eup %2571 }
 0x74b   :  { %v2132_v4 = vmul.f32 %v2572_v3, %v3710_v43 }
 0x74c   :  { %v2574_v6 = vpop.eup %2573 }
 0x74d   :  { %v2134_v5 = vadd.f32 %v2133_v38, %v2132_v4 }
 0x74f   :  { %2575 = vtanh.f32 %v2134_v5 }
 0x75c   :  { %v2576_v7 = vpop.eup %2575 }
 0x75d   :  { %v2136_v8 = vmul.f32 %v2576_v7, %v2574_v6 }
 0x75f   :  { %2138 = vst [vmem:[#allocation12 + $0x30] sm:$0xff] %v2136_v8  ;;  %2273 = vmatmul.mubr.f32.vlgmr.msra.gmra.mxu0 %v2136_v8  ;;  %2344 = vmatmul.mubr.f32.vlgmr.msra.gmra.mxu1 %v2136_v8 }
 0x81f   :  { %v2274_v9 = vpop.f32.mrf.mxu0  ;;  %v2345_v17 = vpop.f32.mrf.mxu1 }
 0x820   :  { %v2350_v12 = vadd.f32 %v2274_v9, %v3984_v10  ;;  %v2352_v23 = vadd.f32 %v2345_v17, %v3987_v22 }
 0x821   :  { %v2276_v13 = vpop.f32.mrf.mxu0  ;;  %v2347_v43 = vpop.f32.mrf.mxu1 }
 0x822   :  { %v2449_v14 = vmul.f32 -1.442695, %v2350_v12  ;;  %v2351_v16 = vadd.f32 %v2276_v13, %v3985_v15  ;;  %v2353_v21 = vadd.f32 %v2347_v43, %v3986_v19 }
 0x824   :  { %2577 = vpow2.f32 %v2449_v14  ;;  %v2450_v18 = vmul.f32 -1.442695, %v2351_v16  ;;  %v2451_v24 = vmul.f32 -1.442695, %v2353_v21 }
 0x826   :  { %2579 = vpow2.f32 %v2450_v18 }
 0x827   :  { %2581 = vtanh.f32 %v2352_v23 }
 0x828   :  { %2583 = vpow2.f32 %v2451_v24 }
 0x831   :  { %v2578_v25 = vpop.eup %2577 }
 0x832   :  { %v2357_v27 = vadd.f32 1.0, %v2578_v25 }
 0x833   :  { %v2580_v28 = vpop.eup %2579 }
 0x834   :  { %2585 = vrcp.f32 %v2357_v27  ;;  %v2363_v30 = vadd.f32 1.0, %v2580_v28  ;;  %v2582_v31 = vpop.eup %2581 }
 0x835   :  { %v2584_v32 = vpop.eup %2583 }
 0x836   :  { %2587 = vrcp.f32 %v2363_v30  ;;  %v2370_v36 = vadd.f32 1.0, %v2584_v32 }
 0x838   :  { %2589 = vrcp.f32 %v2370_v36 }
 0x841   :  { %v2586_v33 = vpop.eup %2585 }
 0x842   :  { %v2374_v34 = vmul.f32 %v2586_v33, %v2582_v31 }
 0x843   :  { %v2588_v35 = vpop.eup %2587 }
 0x844   :  { %v2373_v37 = vmul.f32 %v2588_v35, %v2134_v5 }
 0x845   :  { %v2590_v40 = vpop.eup %2589 }
 0x846   :  { %v2375_v39 = vadd.f32 %v2374_v34, %v2373_v37 }
 0x848   :  { %2591 = vtanh.f32 %v2375_v39  ;;  %2381 = vst [vmem:[#allocation15] sm:$0xff] %v2375_v39 }
 0x855   :  { %v2592_v41 = vpop.eup %2591 }
 0x856   :  { %v2377_v42 = vmul.f32 %v2592_v41, %v2590_v40 }
 0x858   :  { %2379 = vst [vmem:[#allocation12 + $0x38] sm:$0xff] %v2377_v42  ;;  %2380 = vst [vmem:[#allocation13] sm:$0xff] %v2377_v42 }
 0x859   :  { %2704 = shalt.err (!%p2701_p1)
}
 0x85a   :  { %2403 = dma.vmem_to_hbm [thread:$0]  %s2401_s30, 128, %s3743_s7, [#allocation14]  }
 0x85b   :  { %s2713_s17 = scalar_lea.vmem %s2388_s11, 1024  ;;  %p2718_p3 = scmp.lt.s32.totalorder %s2388_s11, %s2388_s11 }
 0x85c   :  { %p2714_p2 = scmp.ne.s32.totalorder %s2388_s11, %s2713_s17  ;;  %p2719_p4 = scmp.lt.s32.totalorder %s2713_s17, %s2713_s17 }
 0x85e   :  { %p2720_p5 = por %p2719_p4, %p2718_p3 }
 0x860   :  { %p2721_p6 = pnand %p2720_p5, %p2714_p2 }
 0x862   :  { %2724 = shalt.err (!%p2721_p6)
}
 0x863   :  { %2393 = dma.vmem_to_hbm [thread:$0]  %s2388_s11, 1024, %s3742_s6, [#allocation5], %s2768_s1, %s2768_s1, %s2769_s20  }
 0x864   :  { %s2733_s21 = scalar_lea.vmem %s2411_s13, 128  ;;  %p2738_p8 = scmp.lt.s32.totalorder %s2411_s13, %s2411_s13 }
 0x865   :  { %p2734_p7 = scmp.ne.s32.totalorder %s2411_s13, %s2733_s21  ;;  %p2739_p9 = scmp.lt.s32.totalorder %s2733_s21, %s2733_s21 }
 0x867   :  { %p2740_p10 = por %p2739_p9, %p2738_p8 }
 0x869   :  { %p2741_p11 = pnand %p2740_p10, %p2734_p7 }
 0x86b   :  { %2744 = shalt.err (!%p2741_p11)
}
 0x86c   :  { %2413 = dma.vmem_to_hbm [thread:$0]  %s2411_s13, 128, %s3744_s8, [#allocation14]  }
 0x86d   :  { %2759 = dma.done.wait [#allocation5], 1024  }
 0x86e   :  { %2760 = vsyncadd [#allocation5], 4294966272 }
 0x86f   :  { %2761 = dma.done.wait [#allocation14], 256  }
 0x870   :  { %2762 = vsyncadd [#allocation14], 4294967040 }
 0x871   :  { %2423 = vsyncpa [#allocation4], 1 }
 0x872   :  { %2424 = vsyncpa [#allocation7], 1 }
 0x873   :  { %2425 = vsyncpa [#allocation10], 1 }
 0x874   :  { %2426 = vsyncpa [#allocation5], 1 }
 0x875   :  { %2427 = vsyncpa [#allocation14], 1 }

</bundles_post_ra>
